<compile_context>
chip_gen: v7x
topology: tpu7x:2x2x1
jax: 0.10.0
libtpu: 0.0.40
codegen_flags: <defaults>
</compile_context>

<pallas_src>
import jax
import jax.numpy as jnp
from jax import lax
from jax.experimental import pallas as pl
from jax.experimental.pallas import tpu as pltpu

# ----- module hyper-parameters (from NeRF_1p_style.__init__) -----
W_HID = 256          # W
D_LAYERS = 8         # D  (len(color_net))
EMB = 256            # StyleVectorizer emb / z_dim
SV_DEPTH = 8         # StyleVectorizer depth
LR_MUL = 0.1
COLOR_OUT = 64       # self.color = nn.Linear(W, 64)
IMAGE_SIZE = 128     # noise resolution
OUT_DIM = COLOR_OUT + 1
OUT_PAD = 128        # lane-dense padded output width

# ----- stub Generator dimensions (Generator class not provided) -----
NUM_TRIPLANES = 2
C_PLANE = 8                              # channels per xy/yz/xz sub-plane
PLANE_RES = 32                           # stand-in triplane resolution
FEAT_ALL = 3 * NUM_TRIPLANES * C_PLANE   # triplane_feature_all (density in_dim)
AXIS_C = NUM_TRIPLANES * C_PLANE         # channels per axis-pair group
NUM_GEN_LAYERS = 5                       # stub Generator.num_layers


# ======================= StyleVectorizer kernel =======================
def style_vectorizer_kernel(z_ref, w_ref, b_ref, o_ref):
    x = z_ref[...].astype(jnp.float32)
    # F.normalize(x, dim=1): x / max(||x||_2, 1e-12)
    norm = jnp.sqrt(jnp.sum(x * x, axis=1, keepdims=True))
    x = x / jnp.maximum(norm, 1e-12)
    for i in range(SV_DEPTH):
        # weights / biases are pre-scaled by lr_mul host-side; weights bf16.
        x = jnp.dot(x.astype(jnp.bfloat16), w_ref[i],
                    preferred_element_type=jnp.float32) + b_ref[i]
        x = jnp.where(x >= 0.0, x, 0.2 * x)          # LeakyReLU(0.2)
    o_ref[...] = x


def style_vectorizer(z, sv_w_bf16, sv_b):
    B = z.shape[0]
    return pl.pallas_call(
        style_vectorizer_kernel,
        out_shape=jax.ShapeDtypeStruct((B, EMB), jnp.float32),
        grid=(1,),
        in_specs=[
            pl.BlockSpec((B, EMB), lambda i: (0, 0)),
            pl.BlockSpec((SV_DEPTH, EMB, EMB), lambda i: (0, 0, 0)),
            pl.BlockSpec((SV_DEPTH, 1, EMB), lambda i: (0, 0, 0)),
        ],
        out_specs=pl.BlockSpec((B, EMB), lambda i: (0, 0)),
    )(z, sv_w_bf16, sv_b)


# ======================= main NeRF kernel =======================
def nerf_kernel(coords_ref, planes_ref, wd_ref, bd_ref, wa_ref, ba_ref,
                wcol_ref, bcol_ref, wc_ref, bc_ref, out_ref):
    coords = coords_ref[0]                    # (tN, 3) f32
    tN = coords.shape[0]

    # --- bilinear hat weights, one per coordinate (shared across planes) ---
    idx = lax.broadcasted_iota(jnp.int32, (tN, PLANE_RES), 1).astype(jnp.float32)
    hats = []
    for k in range(3):
        pos = (coords[:, k:k + 1] + 1.0) * 0.5 * (PLANE_RES - 1)   # align_corners
        hats.append(jnp.maximum(0.0, 1.0 - jnp.abs(pos - idx)))    # (tN, RES)

    # grid[...,0] indexes plane W, grid[...,1] indexes plane H
    plane_axes = ((0, 1), (1, 2), (0, 2))     # (W-axis coord, H-axis coord): xy,yz,xz

    sampled_parts = []
    for s, (a_w, a_h) in enumerate(plane_axes):
        plane = planes_ref[0, s]                                   # (H, NT*C*W) bf16
        wh = hats[a_h].astype(jnp.bfloat16)                        # (tN, H)
        tmp = jnp.dot(wh, plane, preferred_element_type=jnp.float32)  # (tN, NT*C*W)
        tmp = tmp.reshape(tN, AXIS_C, PLANE_RES)
        sampled = jnp.sum(tmp * hats[a_w][:, None, :], axis=-1)    # (tN, NT*C)
        sampled_parts.append(sampled)
    feat = jnp.concatenate(sampled_parts, axis=-1)                 # (tN, FEAT_ALL) f32

    # density_net (no activation in the reference) + pre-folded sigmoid(alpha)
    feat_bf = feat.astype(jnp.bfloat16)
    h0 = jnp.dot(feat_bf, wd_ref[...],
                 preferred_element_type=jnp.float32) + bd_ref[...]  # (tN, W)
    # alpha pre-folded: a = feat @ (wd@wa) + (bd@wa + ba)  (exact: no nonlinearity
    # between density_net and alpha) -> VPU multiply + lane reduce, no MXU pass.
    a = jnp.sum(feat * wa_ref[...], axis=-1, keepdims=True) + ba_ref[...]
    sig = 1.0 / (1.0 + jnp.exp(-a))                                 # (tN, 1)

    # color_net: 8 x (Linear(W, W) + ReLU)
    h = h0
    for i in range(D_LAYERS):
        h = jnp.dot(h.astype(jnp.bfloat16), wcol_ref[i],
                    preferred_element_type=jnp.float32) + bcol_ref[i]
        h = jnp.maximum(h, 0.0)
        # TODO(synk): original code concatenates undefined `input_pts` at skip
        # layer i == 4 (NameError in the PyTorch source); the skip concat is omitted.

    color = jnp.dot(h.astype(jnp.bfloat16), wc_ref[...],
                    preferred_element_type=jnp.float32) + bc_ref[...]   # (tN, 64)

    # Lane-dense single store: cols [0,64) = color, col 64 = sigma,
    # cols [65,128) = sigma replicas (sliced off in the wrapper).
    out_full = jnp.concatenate(
        [color, jnp.broadcast_to(sig, (tN, OUT_PAD - COLOR_OUT))], axis=-1)
    out_ref[0] = out_full


def nerf_forward(x, z, params, planes_packed, *, tile_n=256,
                 run_style_vectorizer=False):
    """x: (B, N, 3), z: (B, 256), planes_packed: (B, 3, H, NT*C*W) bf16
    -> (B, N, 65)."""
    B, N, _ = x.shape
    tile_n = min(tile_n, N)
    assert N % tile_n == 0, (N, tile_n)

    # --- StyleVectorizer path (Pallas). Its result feeds the StyleGAN Generator
    # (self.triplane_density), which is not defined in the reference source, so
    # it is gated off by default (pure perf saving, zero functional change).
    # TODO(synk): wire w -> latent_to_w/styles_def_to_tensor -> Generator once
    # the Generator implementation is available; its triplane output replaces
    # the deterministic `planes_packed` stand-in below.
    if run_style_vectorizer:
        _w = style_vectorizer(z, params["sv_w"], params["sv_b"])   # (B, 256)

    grid = (B, N // tile_n)
    out_pad = pl.pallas_call(
        nerf_kernel,
        out_shape=jax.ShapeDtypeStruct((B, N, OUT_PAD), jnp.float32),
        grid=grid,
        in_specs=[
            pl.BlockSpec((1, tile_n, 3), lambda b, n: (b, n, 0)),
            # TODO(synk): at realistic plane resolutions (e.g. 256x256x32ch) add
            # a grid axis over plane H/axis and set vmem_limit_bytes (v7x VMEM).
            pl.BlockSpec((1, 3, PLANE_RES, AXIS_C * PLANE_RES),
                         lambda b, n: (b, 0, 0, 0)),
            pl.BlockSpec((FEAT_ALL, W_HID), lambda b, n: (0, 0)),
            pl.BlockSpec((1, W_HID), lambda b, n: (0, 0)),
            pl.BlockSpec((1, FEAT_ALL), lambda b, n: (0, 0)),
            pl.BlockSpec((1, 1), lambda b, n: (0, 0)),
            pl.BlockSpec((D_LAYERS, W_HID, W_HID), lambda b, n: (0, 0, 0)),
            pl.BlockSpec((D_LAYERS, 1, W_HID), lambda b, n: (0, 0, 0)),
            pl.BlockSpec((W_HID, COLOR_OUT), lambda b, n: (0, 0)),
            pl.BlockSpec((1, COLOR_OUT), lambda b, n: (0, 0)),
        ],
        out_specs=pl.BlockSpec((1, tile_n, OUT_PAD), lambda b, n: (b, n, 0)),
        compiler_params=pltpu.CompilerParams(
            dimension_semantics=("parallel", "parallel")),
    )(x, planes_packed, params["wd"], params["bd"], params["wa_fold"],
      params["ba_fold"], params["wcol"], params["bcol"], params["wc"],
      params["bc"])
    return out_pad[:, :, :OUT_DIM]


# ======================= host-side packing helpers =======================
def pack_planes(triplanes):
    """(NT, B, 3*C, H, W) -> (B, 3, H, NT*C*W) bf16, channel-major lane blocks."""
    NT, B, C3, H, W = triplanes.shape
    C = C3 // 3
    groups = []
    for s in range(3):                                   # xy, yz, xz
        sub = triplanes[:, :, s * C:(s + 1) * C]         # (NT, B, C, H, W)
        sub = jnp.transpose(sub, (1, 3, 0, 2, 4))        # (B, H, NT, C, W)
        groups.append(sub.reshape(B, H, NT * C * W))
    return jnp.stack(groups, axis=1).astype(jnp.bfloat16)


def pack_params(raw):
    """Host-side: permute wd rows to the kernel feat ordering, fold the alpha
    head, pre-scale StyleVectorizer weights by lr_mul, cast weights to bf16."""
    # canonical (PyTorch) feature order: channel = t*3*C + s*C + c
    # kernel feature order:              channel = s*NT*C + t*C + c
    perm = jnp.array([t * 3 * C_PLANE + s * C_PLANE + c
                      for s in range(3)
                      for t in range(NUM_TRIPLANES)
                      for c in range(C_PLANE)], dtype=jnp.int32)
    wd_k = raw["wd"][perm]                                        # (FEAT_ALL, W)
    wa_fold = (wd_k @ raw["wa"]).T                                # (1, FEAT_ALL)
    ba_fold = raw["bd"] @ raw["wa"] + raw["ba"]                   # (1, 1)
    return {
        "wd": wd_k.astype(jnp.bfloat16),
        "bd": raw["bd"].astype(jnp.float32),
        "wa_fold": wa_fold.astype(jnp.float32),
        "ba_fold": ba_fold.astype(jnp.float32),
        "wcol": raw["wcol"].astype(jnp.bfloat16),
        "bcol": raw["bcol"].astype(jnp.float32),
        "wc": raw["wc"].astype(jnp.bfloat16),
        "bc": raw["bc"].astype(jnp.float32),
        "sv_w": (raw["sv_w"] * LR_MUL).astype(jnp.bfloat16),
        "sv_b": (raw["sv_b"] * LR_MUL).astype(jnp.float32),
    }


if __name__ == "__main__":
    key = jax.random.PRNGKey(0)
    ks = jax.random.split(key, 12)

    B, N = 2, 512
    x = jax.random.uniform(ks[0], (B, N, 3), jnp.float32, -1.0, 1.0)
    z = jax.random.normal(ks[1], (B, EMB), jnp.float32)

    raw_params = {
        # StyleVectorizer: 8 x EqualLinear(256, 256, lr_mul=0.1); weights ~ randn,
        # biases zero; stored pre-transposed to (in, out).
        "sv_w": jax.random.normal(ks[2], (SV_DEPTH, EMB, EMB), jnp.float32),
        "sv_b": jnp.zeros((SV_DEPTH, 1, EMB), jnp.float32),
        # density_net: Linear(triplane_feature_all, W)   (pre-transposed)
        "wd": jax.random.normal(ks[3], (FEAT_ALL, W_HID), jnp.float32) * 0.05,
        "bd": jnp.zeros((1, W_HID), jnp.float32),
        # alpha: Linear(W, 1)
        "wa": jax.random.normal(ks[4], (W_HID, 1), jnp.float32) * 0.05,
        "ba": jnp.zeros((1, 1), jnp.float32),
        # color_net: 8 x Linear(W, W)
        "wcol": jax.random.normal(ks[5], (D_LAYERS, W_HID, W_HID), jnp.float32) * 0.05,
        "bcol": jnp.zeros((D_LAYERS, 1, W_HID), jnp.float32),
        # color: Linear(W, 64)
        "wc": jax.random.normal(ks[6], (W_HID, COLOR_OUT), jnp.float32) * 0.05,
        "bc": jnp.zeros((1, COLOR_OUT), jnp.float32),
        # self.noise = image_noise(1, 128): consumed only by the missing Generator.
        "noise": jax.random.uniform(ks[7], (1, IMAGE_SIZE, IMAGE_SIZE, 1), jnp.float32),
    }
    params = pack_params(raw_params)

    # Deterministic stand-in for Generator triplane outputs:
    # (num_triplanes, B, 3*C, H, W), repacked per axis pair to (B, 3, H, NT*C*W).
    triplanes = jax.random.normal(
        ks[8], (NUM_TRIPLANES, B, 3 * C_PLANE, PLANE_RES, PLANE_RES),
        jnp.float32) * 0.1
    planes_packed = pack_planes(triplanes)

    # run_style_vectorizer=True only to exercise/validate that kernel while the
    # Generator stub is absent; leave it at the default False in perf-critical
    # runs (its result is unused today).
    out = nerf_forward(x, z, params, planes_packed, tile_n=256,
                       run_style_vectorizer=True)
    out = jax.block_until_ready(out)
    assert out.shape == (B, N, OUT_DIM), out.shape
    assert bool(jnp.all(jnp.isfinite(out)))
    print("KERNEL_OK")
</pallas_src>

<mosaic_0001>
module attributes {stable_mosaic.version = 11 : i64} {
  func.func @style_vectorizer_kernel(%arg0: i32, %arg1: memref<2x256xf32, #tpu.memory_space<vmem>>, %arg2: memref<8x256x256xbf16, #tpu.memory_space<vmem>>, %arg3: memref<8x1x256xf32, #tpu.memory_space<vmem>>, %arg4: memref<2x256xf32, #tpu.memory_space<vmem>>) attributes {dimension_semantics = [#tpu.dimension_semantics<arbitrary>], iteration_bounds = array<i64: 1>, scalar_prefetch = 0 : i64, scratch_operands = 0 : i64, tpu.core_type = #tpu.core_type<tc>, window_params = [{pipeline_mode = #tpu.pipeline_mode<synchronous>, transform_indices = @transform_0, window_bounds = array<i64: 2, 256>}, {pipeline_mode = #tpu.pipeline_mode<synchronous>, transform_indices = @transform_1, window_bounds = array<i64: 8, 256, 256>}, {pipeline_mode = #tpu.pipeline_mode<synchronous>, transform_indices = @transform_2, window_bounds = array<i64: 8, 1, 256>}, {pipeline_mode = #tpu.pipeline_mode<synchronous>, transform_indices = @transform_3, window_bounds = array<i64: 2, 256>}]} {
    %c0 = arith.constant 0 : index
    %c0_0 = arith.constant 0 : index
    %0 = vector.load %arg1[%c0, %c0_0] : memref<2x256xf32, #tpu.memory_space<vmem>>, vector<2x256xf32>
    %1 = arith.mulf %0, %0 : vector<2x256xf32>
    %cst = arith.constant dense<0.000000e+00> : vector<2xf32>
    %2 = vector.multi_reduction <add>, %1, %cst [1] : vector<2x256xf32> to vector<2xf32>
    %3 = vector.shape_cast %2 : vector<2xf32> to vector<2x1xf32>
    %4 = math.sqrt %3 : vector<2x1xf32>
    %cst_1 = arith.constant 9.99999996E-13 : f32
    %5 = vector.broadcast %cst_1 : f32 to vector<2x1xf32>
    %6 = arith.maximumf %4, %5 : vector<2x1xf32>
    %7 = vector.broadcast %6 : vector<2x1xf32> to vector<2x256xf32>
    %8 = arith.divf %0, %7 : vector<2x256xf32>
    %9 = arith.truncf %8 : vector<2x256xf32> to vector<2x256xbf16>
    %c0_2 = arith.constant 0 : index
    %c0_3 = arith.constant 0 : index
    %c0_4 = arith.constant 0 : index
    %10 = vector.load %arg2[%c0_2, %c0_3, %c0_4] : memref<8x256x256xbf16, #tpu.memory_space<vmem>>, vector<1x256x256xbf16>
    %11 = vector.shape_cast %10 : vector<1x256x256xbf16> to vector<256x256xbf16>
    %cst_5 = arith.constant dense<0.000000e+00> : vector<2x256xf32>
    %12 = tpu.matmul %9, %11, %cst_5 {dimension_numbers = #tpu.dot_dimension_numbers<[1], [0], [0], [1], [0, 0, 1, 1], [], []>} : vector<2x256xbf16>, vector<256x256xbf16>, vector<2x256xf32> -> vector<2x256xf32>
    %c0_6 = arith.constant 0 : index
    %c0_7 = arith.constant 0 : index
    %c0_8 = arith.constant 0 : index
    %13 = vector.load %arg3[%c0_6, %c0_7, %c0_8] : memref<8x1x256xf32, #tpu.memory_space<vmem>>, vector<1x1x256xf32>
    %14 = vector.shape_cast %13 : vector<1x1x256xf32> to vector<1x256xf32>
    %15 = vector.broadcast %14 : vector<1x256xf32> to vector<2x256xf32>
    %16 = arith.addf %12, %15 : vector<2x256xf32>
    %cst_9 = arith.constant 0.000000e+00 : f32
    %17 = vector.broadcast %cst_9 : f32 to vector<2x256xf32>
    %18 = arith.cmpf oge, %16, %17 : vector<2x256xf32>
    %cst_10 = arith.constant 2.000000e-01 : f32
    %19 = vector.broadcast %cst_10 : f32 to vector<2x256xf32>
    %20 = arith.mulf %19, %16 : vector<2x256xf32>
    %21 = arith.select %18, %16, %20 : vector<2x256xi1>, vector<2x256xf32>
    %22 = arith.truncf %21 : vector<2x256xf32> to vector<2x256xbf16>
    %c1 = arith.constant 1 : index
    %c0_11 = arith.constant 0 : index
    %c0_12 = arith.constant 0 : index
    %23 = vector.load %arg2[%c1, %c0_11, %c0_12] : memref<8x256x256xbf16, #tpu.memory_space<vmem>>, vector<1x256x256xbf16>
    %24 = vector.shape_cast %23 : vector<1x256x256xbf16> to vector<256x256xbf16>
    %cst_13 = arith.constant dense<0.000000e+00> : vector<2x256xf32>
    %25 = tpu.matmul %22, %24, %cst_13 {dimension_numbers = #tpu.dot_dimension_numbers<[1], [0], [0], [1], [0, 0, 1, 1], [], []>} : vector<2x256xbf16>, vector<256x256xbf16>, vector<2x256xf32> -> vector<2x256xf32>
    %c1_14 = arith.constant 1 : index
    %c0_15 = arith.constant 0 : index
    %c0_16 = arith.constant 0 : index
    %26 = vector.load %arg3[%c1_14, %c0_15, %c0_16] : memref<8x1x256xf32, #tpu.memory_space<vmem>>, vector<1x1x256xf32>
    %27 = vector.shape_cast %26 : vector<1x1x256xf32> to vector<1x256xf32>
    %28 = vector.broadcast %27 : vector<1x256xf32> to vector<2x256xf32>
    %29 = arith.addf %25, %28 : vector<2x256xf32>
    %cst_17 = arith.constant 0.000000e+00 : f32
    %30 = vector.broadcast %cst_17 : f32 to vector<2x256xf32>
    %31 = arith.cmpf oge, %29, %30 : vector<2x256xf32>
    %cst_18 = arith.constant 2.000000e-01 : f32
    %32 = vector.broadcast %cst_18 : f32 to vector<2x256xf32>
    %33 = arith.mulf %32, %29 : vector<2x256xf32>
    %34 = arith.select %31, %29, %33 : vector<2x256xi1>, vector<2x256xf32>
    %35 = arith.truncf %34 : vector<2x256xf32> to vector<2x256xbf16>
    %c2 = arith.constant 2 : index
    %c0_19 = arith.constant 0 : index
    %c0_20 = arith.constant 0 : index
    %36 = vector.load %arg2[%c2, %c0_19, %c0_20] : memref<8x256x256xbf16, #tpu.memory_space<vmem>>, vector<1x256x256xbf16>
    %37 = vector.shape_cast %36 : vector<1x256x256xbf16> to vector<256x256xbf16>
    %cst_21 = arith.constant dense<0.000000e+00> : vector<2x256xf32>
    %38 = tpu.matmul %35, %37, %cst_21 {dimension_numbers = #tpu.dot_dimension_numbers<[1], [0], [0], [1], [0, 0, 1, 1], [], []>} : vector<2x256xbf16>, vector<256x256xbf16>, vector<2x256xf32> -> vector<2x256xf32>
    %c2_22 = arith.constant 2 : index
    %c0_23 = arith.constant 0 : index
    %c0_24 = arith.constant 0 : index
    %39 = vector.load %arg3[%c2_22, %c0_23, %c0_24] : memref<8x1x256xf32, #tpu.memory_space<vmem>>, vector<1x1x256xf32>
    %40 = vector.shape_cast %39 : vector<1x1x256xf32> to vector<1x256xf32>
    %41 = vector.broadcast %40 : vector<1x256xf32> to vector<2x256xf32>
    %42 = arith.addf %38, %41 : vector<2x256xf32>
    %cst_25 = arith.constant 0.000000e+00 : f32
    %43 = vector.broadcast %cst_25 : f32 to vector<2x256xf32>
    %44 = arith.cmpf oge, %42, %43 : vector<2x256xf32>
    %cst_26 = arith.constant 2.000000e-01 : f32
    %45 = vector.broadcast %cst_26 : f32 to vector<2x256xf32>
    %46 = arith.mulf %45, %42 : vector<2x256xf32>
    %47 = arith.select %44, %42, %46 : vector<2x256xi1>, vector<2x256xf32>
    %48 = arith.truncf %47 : vector<2x256xf32> to vector<2x256xbf16>
    %c3 = arith.constant 3 : index
    %c0_27 = arith.constant 0 : index
    %c0_28 = arith.constant 0 : index
    %49 = vector.load %arg2[%c3, %c0_27, %c0_28] : memref<8x256x256xbf16, #tpu.memory_space<vmem>>, vector<1x256x256xbf16>
    %50 = vector.shape_cast %49 : vector<1x256x256xbf16> to vector<256x256xbf16>
    %cst_29 = arith.constant dense<0.000000e+00> : vector<2x256xf32>
    %51 = tpu.matmul %48, %50, %cst_29 {dimension_numbers = #tpu.dot_dimension_numbers<[1], [0], [0], [1], [0, 0, 1, 1], [], []>} : vector<2x256xbf16>, vector<256x256xbf16>, vector<2x256xf32> -> vector<2x256xf32>
    %c3_30 = arith.constant 3 : index
    %c0_31 = arith.constant 0 : index
    %c0_32 = arith.constant 0 : index
    %52 = vector.load %arg3[%c3_30, %c0_31, %c0_32] : memref<8x1x256xf32, #tpu.memory_space<vmem>>, vector<1x1x256xf32>
    %53 = vector.shape_cast %52 : vector<1x1x256xf32> to vector<1x256xf32>
    %54 = vector.broadcast %53 : vector<1x256xf32> to vector<2x256xf32>
    %55 = arith.addf %51, %54 : vector<2x256xf32>
    %cst_33 = arith.constant 0.000000e+00 : f32
    %56 = vector.broadcast %cst_33 : f32 to vector<2x256xf32>
    %57 = arith.cmpf oge, %55, %56 : vector<2x256xf32>
    %cst_34 = arith.constant 2.000000e-01 : f32
    %58 = vector.broadcast %cst_34 : f32 to vector<2x256xf32>
    %59 = arith.mulf %58, %55 : vector<2x256xf32>
    %60 = arith.select %57, %55, %59 : vector<2x256xi1>, vector<2x256xf32>
    %61 = arith.truncf %60 : vector<2x256xf32> to vector<2x256xbf16>
    %c4 = arith.constant 4 : index
    %c0_35 = arith.constant 0 : index
    %c0_36 = arith.constant 0 : index
    %62 = vector.load %arg2[%c4, %c0_35, %c0_36] : memref<8x256x256xbf16, #tpu.memory_space<vmem>>, vector<1x256x256xbf16>
    %63 = vector.shape_cast %62 : vector<1x256x256xbf16> to vector<256x256xbf16>
    %cst_37 = arith.constant dense<0.000000e+00> : vector<2x256xf32>
    %64 = tpu.matmul %61, %63, %cst_37 {dimension_numbers = #tpu.dot_dimension_numbers<[1], [0], [0], [1], [0, 0, 1, 1], [], []>} : vector<2x256xbf16>, vector<256x256xbf16>, vector<2x256xf32> -> vector<2x256xf32>
    %c4_38 = arith.constant 4 : index
    %c0_39 = arith.constant 0 : index
    %c0_40 = arith.constant 0 : index
    %65 = vector.load %arg3[%c4_38, %c0_39, %c0_40] : memref<8x1x256xf32, #tpu.memory_space<vmem>>, vector<1x1x256xf32>
    %66 = vector.shape_cast %65 : vector<1x1x256xf32> to vector<1x256xf32>
    %67 = vector.broadcast %66 : vector<1x256xf32> to vector<2x256xf32>
    %68 = arith.addf %64, %67 : vector<2x256xf32>
    %cst_41 = arith.constant 0.000000e+00 : f32
    %69 = vector.broadcast %cst_41 : f32 to vector<2x256xf32>
    %70 = arith.cmpf oge, %68, %69 : vector<2x256xf32>
    %cst_42 = arith.constant 2.000000e-01 : f32
    %71 = vector.broadcast %cst_42 : f32 to vector<2x256xf32>
    %72 = arith.mulf %71, %68 : vector<2x256xf32>
    %73 = arith.select %70, %68, %72 : vector<2x256xi1>, vector<2x256xf32>
    %74 = arith.truncf %73 : vector<2x256xf32> to vector<2x256xbf16>
    %c5 = arith.constant 5 : index
    %c0_43 = arith.constant 0 : index
    %c0_44 = arith.constant 0 : index
    %75 = vector.load %arg2[%c5, %c0_43, %c0_44] : memref<8x256x256xbf16, #tpu.memory_space<vmem>>, vector<1x256x256xbf16>
    %76 = vector.shape_cast %75 : vector<1x256x256xbf16> to vector<256x256xbf16>
    %cst_45 = arith.constant dense<0.000000e+00> : vector<2x256xf32>
    %77 = tpu.matmul %74, %76, %cst_45 {dimension_numbers = #tpu.dot_dimension_numbers<[1], [0], [0], [1], [0, 0, 1, 1], [], []>} : vector<2x256xbf16>, vector<256x256xbf16>, vector<2x256xf32> -> vector<2x256xf32>
    %c5_46 = arith.constant 5 : index
    %c0_47 = arith.constant 0 : index
    %c0_48 = arith.constant 0 : index
    %78 = vector.load %arg3[%c5_46, %c0_47, %c0_48] : memref<8x1x256xf32, #tpu.memory_space<vmem>>, vector<1x1x256xf32>
    %79 = vector.shape_cast %78 : vector<1x1x256xf32> to vector<1x256xf32>
    %80 = vector.broadcast %79 : vector<1x256xf32> to vector<2x256xf32>
    %81 = arith.addf %77, %80 : vector<2x256xf32>
    %cst_49 = arith.constant 0.000000e+00 : f32
    %82 = vector.broadcast %cst_49 : f32 to vector<2x256xf32>
    %83 = arith.cmpf oge, %81, %82 : vector<2x256xf32>
    %cst_50 = arith.constant 2.000000e-01 : f32
    %84 = vector.broadcast %cst_50 : f32 to vector<2x256xf32>
    %85 = arith.mulf %84, %81 : vector<2x256xf32>
    %86 = arith.select %83, %81, %85 : vector<2x256xi1>, vector<2x256xf32>
    %87 = arith.truncf %86 : vector<2x256xf32> to vector<2x256xbf16>
    %c6 = arith.constant 6 : index
    %c0_51 = arith.constant 0 : index
    %c0_52 = arith.constant 0 : index
    %88 = vector.load %arg2[%c6, %c0_51, %c0_52] : memref<8x256x256xbf16, #tpu.memory_space<vmem>>, vector<1x256x256xbf16>
    %89 = vector.shape_cast %88 : vector<1x256x256xbf16> to vector<256x256xbf16>
    %cst_53 = arith.constant dense<0.000000e+00> : vector<2x256xf32>
    %90 = tpu.matmul %87, %89, %cst_53 {dimension_numbers = #tpu.dot_dimension_numbers<[1], [0], [0], [1], [0, 0, 1, 1], [], []>} : vector<2x256xbf16>, vector<256x256xbf16>, vector<2x256xf32> -> vector<2x256xf32>
    %c6_54 = arith.constant 6 : index
    %c0_55 = arith.constant 0 : index
    %c0_56 = arith.constant 0 : index
    %91 = vector.load %arg3[%c6_54, %c0_55, %c0_56] : memref<8x1x256xf32, #tpu.memory_space<vmem>>, vector<1x1x256xf32>
    %92 = vector.shape_cast %91 : vector<1x1x256xf32> to vector<1x256xf32>
    %93 = vector.broadcast %92 : vector<1x256xf32> to vector<2x256xf32>
    %94 = arith.addf %90, %93 : vector<2x256xf32>
    %cst_57 = arith.constant 0.000000e+00 : f32
    %95 = vector.broadcast %cst_57 : f32 to vector<2x256xf32>
    %96 = arith.cmpf oge, %94, %95 : vector<2x256xf32>
    %cst_58 = arith.constant 2.000000e-01 : f32
    %97 = vector.broadcast %cst_58 : f32 to vector<2x256xf32>
    %98 = arith.mulf %97, %94 : vector<2x256xf32>
    %99 = arith.select %96, %94, %98 : vector<2x256xi1>, vector<2x256xf32>
    %100 = arith.truncf %99 : vector<2x256xf32> to vector<2x256xbf16>
    %c7 = arith.constant 7 : index
    %c0_59 = arith.constant 0 : index
    %c0_60 = arith.constant 0 : index
    %101 = vector.load %arg2[%c7, %c0_59, %c0_60] : memref<8x256x256xbf16, #tpu.memory_space<vmem>>, vector<1x256x256xbf16>
    %102 = vector.shape_cast %101 : vector<1x256x256xbf16> to vector<256x256xbf16>
    %cst_61 = arith.constant dense<0.000000e+00> : vector<2x256xf32>
    %103 = tpu.matmul %100, %102, %cst_61 {dimension_numbers = #tpu.dot_dimension_numbers<[1], [0], [0], [1], [0, 0, 1, 1], [], []>} : vector<2x256xbf16>, vector<256x256xbf16>, vector<2x256xf32> -> vector<2x256xf32>
    %c7_62 = arith.constant 7 : index
    %c0_63 = arith.constant 0 : index
    %c0_64 = arith.constant 0 : index
    %104 = vector.load %arg3[%c7_62, %c0_63, %c0_64] : memref<8x1x256xf32, #tpu.memory_space<vmem>>, vector<1x1x256xf32>
    %105 = vector.shape_cast %104 : vector<1x1x256xf32> to vector<1x256xf32>
    %106 = vector.broadcast %105 : vector<1x256xf32> to vector<2x256xf32>
    %107 = arith.addf %103, %106 : vector<2x256xf32>
    %cst_65 = arith.constant 0.000000e+00 : f32
    %108 = vector.broadcast %cst_65 : f32 to vector<2x256xf32>
    %109 = arith.cmpf oge, %107, %108 : vector<2x256xf32>
    %cst_66 = arith.constant 2.000000e-01 : f32
    %110 = vector.broadcast %cst_66 : f32 to vector<2x256xf32>
    %111 = arith.mulf %110, %107 : vector<2x256xf32>
    %112 = arith.select %109, %107, %111 : vector<2x256xi1>, vector<2x256xf32>
    %c0_67 = arith.constant 0 : index
    %c0_68 = arith.constant 0 : index
    %113 = vector.load %arg4[%c0_67, %c0_68] : memref<2x256xf32, #tpu.memory_space<vmem>>, vector<2x256xf32>
    tpu.vector_store %arg4[%c0_67, %c0_68], %112 {strides = array<i32>} : memref<2x256xf32, #tpu.memory_space<vmem>>, vector<2x256xf32>,
    return
  }
  func.func @transform_0(%arg0: i32) -> (i32, i32) {
    %c0_i32 = arith.constant 0 : i32
    %c0_i32_0 = arith.constant 0 : i32
    %c0_i32_1 = arith.constant 0 : i32
    return %c0_i32, %c0_i32_0 : i32, i32
  }
  func.func @transform_1(%arg0: i32) -> (i32, i32, i32) {
    %c0_i32 = arith.constant 0 : i32
    %c0_i32_0 = arith.constant 0 : i32
    %c0_i32_1 = arith.constant 0 : i32
    %c0_i32_2 = arith.constant 0 : i32
    return %c0_i32, %c0_i32_0, %c0_i32_1 : i32, i32, i32
  }
  func.func @transform_2(%arg0: i32) -> (i32, i32, i32) {
    %c0_i32 = arith.constant 0 : i32
    %c0_i32_0 = arith.constant 0 : i32
    %c0_i32_1 = arith.constant 0 : i32
    %c0_i32_2 = arith.constant 0 : i32
    return %c0_i32, %c0_i32_0, %c0_i32_1 : i32, i32, i32
  }
  func.func @transform_3(%arg0: i32) -> (i32, i32) {
    %c0_i32 = arith.constant 0 : i32
    %c0_i32_0 = arith.constant 0 : i32
    %c0_i32_1 = arith.constant 0 : i32
    return %c0_i32, %c0_i32_0 : i32, i32
  }
}

</mosaic_0001>

<bundles_post_ra>
// kernel: tpu_custom_call.1
= control target key start
LH: loop header
LB: loop body
LE: loop exit
PB: predicated region body
PF: predicated region fallthrough
CT: control target
= control target key end

     0   :  { %8 = vsyncpa [#allocation3], 0  ;;  %s3031_s0 = inlined_call_operand.hbm [shape: f32[2,256], index: 0, kind: input, shape index: {}]   ;;  %s3032_s1 = inlined_call_operand.hbm [shape: bf16[8,256,256], index: 1, kind: input, shape index: {}]   ;;  %s3033_s2 = inlined_call_operand.hbm [shape: f32[8,1,256], index: 2, kind: input, shape index: {}]   ;;  %s3034_s3 = inlined_call_operand.hbm [shape: f32[2,256], index: 3, kind: output, shape index: {}]  }
   0x1   :  { %9 = vsyncpa [#allocation6], 0 }
   0x2   :  { %10 = vsyncpa [#allocation4], 0  ;;  %s2918_s12 = smov [#allocation5]   ;;  %s2824_s16 = scalar_lea.hbm %s3032_s1, 32768 }
   0x3   :  { %s26_s13 = sshll.u32 %s2918_s12, 4  ;;  %p2825_p0 = scmp.ne.s32.totalorder %s3032_s1, %s2824_s16  ;;  %s27_s13 = int_to_ptr.vmem [resolvable:$true] %s26_s13 }
   0x4   :  { %p2828_p1 = scmp.lt.u32.totalorder %s2824_s16, %s3032_s1 }
   0x6   :  { %p2830_p2 = pnand %p2828_p1, %p2825_p0 }
   0x8   :  { %2833 = shalt.err (!%p2830_p2)
}
   0x9   :  { %s2834_s21 = scalar_lea.vmem %s27_s13, 32768  ;;  %p2839_p4 = scmp.lt.s32.totalorder %s27_s13, %s27_s13 }
   0xa   :  { %p2835_p3 = scmp.ne.s32.totalorder %s27_s13, %s2834_s21  ;;  %p2840_p5 = scmp.lt.s32.totalorder %s2834_s21, %s2834_s21 }
   0xc   :  { %p2841_p6 = por %p2840_p5, %p2839_p4 }
   0xe   :  { %p2842_p7 = pnand %p2841_p6, %p2835_p3 }
  0x10   :  { %2845 = shalt.err (!%p2842_p7)
}
  0x11   :  { %s2919_s22 = smov 128   ;;  %s2920_s23 = smov 8  }
  0x12   :  { %32 = dma.hbm_to_vmem [thread:$0]  %s3032_s1, 32768, %s27_s13, [#allocation6], %s2919_s22, %s2919_s22, %s2920_s23  }
  0x13   :  { %s2921_s26 = smov [#allocation2]   ;;  %s2922_s28 = smov [#allocation7]  }
  0x14   :  { %s17_s27 = sshll.u32 %s2921_s26, 4  ;;  %s38_s29 = sshll.u32 %s2922_s28, 4  ;;  %s18_s27 = int_to_ptr.vmem [resolvable:$true] %s17_s27  ;;  %s39_s29 = int_to_ptr.vmem [resolvable:$true] %s38_s29 }
  0x15   :  { %s2846_s5 = scalar_lea.hbm %s3031_s0, 64 }
  0x16   :  { %p2847_p8 = scmp.ne.s32.totalorder %s3031_s0, %s2846_s5  ;;  %p2850_p9 = scmp.lt.u32.totalorder %s2846_s5, %s3031_s0 }
  0x18   :  { %p2852_p10 = pnand %p2850_p9, %p2847_p8 }
  0x1a   :  { %2855 = shalt.err (!%p2852_p10)
}
  0x1b   :  { %s2856_s1 = scalar_lea.vmem %s18_s27, 64  ;;  %p2861_p12 = scmp.lt.s32.totalorder %s18_s27, %s18_s27 }
  0x1c   :  { %p2857_p11 = scmp.ne.s32.totalorder %s18_s27, %s2856_s1  ;;  %p2862_p13 = scmp.lt.s32.totalorder %s2856_s1, %s2856_s1 }
  0x1e   :  { %p2863_p0 = por %p2862_p13, %p2861_p12 }
  0x20   :  { %p2864_p1 = pnand %p2863_p0, %p2857_p11 }
  0x22   :  { %2867 = shalt.err (!%p2864_p1)
}
  0x23   :  { %20 = dma.hbm_to_vmem [thread:$0]  %s3031_s0, 64, %s18_s27, [#allocation3]  }
  0x24   :  { %s2868_s14 = scalar_lea.hbm %s3033_s2, 256 }
  0x25   :  { %p2869_p2 = scmp.ne.s32.totalorder %s3033_s2, %s2868_s14  ;;  %p2872_p3 = scmp.lt.u32.totalorder %s2868_s14, %s3033_s2 }
  0x27   :  { %p2874_p4 = pnand %p2872_p3, %p2869_p2 }
  0x29   :  { %2877 = shalt.err (!%p2874_p4)
}
  0x2a   :  { %s2878_s19 = scalar_lea.vmem %s39_s29, 256  ;;  %p2883_p6 = scmp.lt.s32.totalorder %s39_s29, %s39_s29 }
  0x2b   :  { %p2879_p5 = scmp.ne.s32.totalorder %s39_s29, %s2878_s19  ;;  %p2884_p7 = scmp.lt.s32.totalorder %s2878_s19, %s2878_s19 }
  0x2d   :  { %p2885_p8 = por %p2884_p7, %p2883_p6 }
  0x2f   :  { %p2886_p9 = pnand %p2885_p8, %p2879_p5 }
  0x31   :  { %2889 = shalt.err (!%p2886_p9)
}
  0x32   :  { %s2923_s0 = smov 32   ;;  %s2924_s20 = smov 2  }
  0x33   :  { %44 = dma.hbm_to_vmem [thread:$0]  %s3033_s2, 256, %s39_s29, [#allocation6], %s2923_s0, %s2923_s0, %s2924_s20  }
  0x34   :  { %2912 = dma.done.wait [#allocation3], 64  }
  0x35   :  { %2913 = vsyncadd [#allocation3], 4294967232 }
  0x36   :  { %2914 = dma.done.wait [#allocation6], 33024  }
  0x37   :  { %2915 = vsyncadd [#allocation6], 4294934272  ;;  %v60_v0 = vlaneseq  ;;  %v2925_v1 = vmov 1983009808   ;;  %v2989_v6 = vld [vmem:[#allocation2] sm:$0xf] }
  0x38   :  { %v58_v2 = vunpack.c.l.s4 %v2925_v1  ;;  %v55_v7 = vmul.f32 %v2989_v6, %v2989_v6  ;;  %v2436_v8 = vld [vmem:[#allocation5 + $0x4] ss:$8 sps:$4 sm:$0xff]   ;;  %v2438_v9 = vld [vmem:[#allocation5] ss:$8 sps:$4 sm:$0xff]   ;;  %vm67_vm0 = vcmask 1041408   ;;  %s2927_s2 = smov [#allocation8]  }
  0x39   :  { %v2984_v3 = vshrl.u32 %v60_v0, 7  ;;  %v2439_v10 = vld [vmem:[#allocation5 + $0x14] ss:$8 sps:$4 sm:$0xff]   ;;  %309 = vmatprep.subr.bf16.mxu0 %v2436_v8  ;;  %v2441_v12 = vld [vmem:[#allocation5 + $0x10] ss:$8 sps:$4 sm:$0xff]   ;;  %s2159_s23 = sshll.u32 %s2927_s2, 4  ;;  %s2160_s23 = int_to_ptr.vmem [resolvable:$true] %s2159_s23 }
  0x3a   :  { %v59_v4 = vunpack.c.0.s8 %v58_v2  ;;  %310 = vmatpush1.bf16.msra.mxu0 %v2438_v9  ;;  %v2442_v15 = vld [vmem:[#allocation5 + $0x24] ss:$8 sps:$4 sm:$0xff]   ;;  %v2444_v17 = vld [vmem:[#allocation5 + $0x20] ss:$8 sps:$4 sm:$0xff]   ;;  %v2445_v19 = vld [vmem:[#allocation5 + $0x34] ss:$8 sps:$4 sm:$0xff]   ;;  %p2895_p11 = scmp.lt.s32.totalorder %s2160_s23, %s2160_s23 }
  0x3b   :  { %311 = vmatprep.subr.bf16.mxu0 %v2439_v10  ;;  %v2447_v20 = vld [vmem:[#allocation5 + $0x30] ss:$8 sps:$4 sm:$0xff]   ;;  %v2448_v21 = vld [vmem:[#allocation5 + $0x44] ss:$8 sps:$4 sm:$0xff]   ;;  %v2450_v22 = vld [vmem:[#allocation5 + $0x40] ss:$8 sps:$4 sm:$0xff]  }
  0x3c   :  { %v2987_v5 = vsub.s32 %v59_v4, %v2984_v3  ;;  %v2451_v23 = vld [vmem:[#allocation5 + $0x54] ss:$8 sps:$4 sm:$0xff]   ;;  %v2453_v24 = vld [vmem:[#allocation5 + $0x50] ss:$8 sps:$4 sm:$0xff]   ;;  %v2454_v25 = vld [vmem:[#allocation5 + $0x64] ss:$8 sps:$4 sm:$0xff]  }
  0x3d   :  { %v2456_v26 = vld [vmem:[#allocation5 + $0x60] ss:$8 sps:$4 sm:$0xff]   ;;  %v2457_v27 = vld [vmem:[#allocation5 + $0x74] ss:$8 sps:$4 sm:$0xff]   ;;  %v2459_v28 = vld [vmem:[#allocation5 + $0x70] ss:$8 sps:$4 sm:$0xff]  }
  0x3e   :  { %v63_v11 = vrot.slane %v55_v7, %v2987_v5  ;;  %312 = vmatpush1.bf16.msra.mxu0 %v2441_v12  ;;  %v2460_v29 = vld [vmem:[#allocation5 + $0x84] ss:$8 sps:$4 sm:$0xff]   ;;  %v2462_v30 = vld [vmem:[#allocation5 + $0x80] ss:$8 sps:$4 sm:$0xff]   ;;  %v2463_v31 = vld [vmem:[#allocation5 + $0x94] ss:$8 sps:$4 sm:$0xff]  }
  0x3f   :  { %313 = vmatprep.subr.bf16.mxu0 %v2442_v15  ;;  %v2465_v32 = vld [vmem:[#allocation5 + $0x90] ss:$8 sps:$4 sm:$0xff]   ;;  %v2466_v33 = vld [vmem:[#allocation5 + $0xa4] ss:$8 sps:$4 sm:$0xff]   ;;  %v2468_v34 = vld [vmem:[#allocation5 + $0xa0] ss:$8 sps:$4 sm:$0xff]  }
  0x40   :  { %v64_v13 = vcombine.high %v63_v11, %v63_v11  ;;  %v68_v14 = vsel %vm67_vm0, %v63_v11, 0.0  ;;  %v2469_v35 = vld [vmem:[#allocation5 + $0xb4] ss:$8 sps:$4 sm:$0xff]   ;;  %v2471_v36 = vld [vmem:[#allocation5 + $0xb0] ss:$8 sps:$4 sm:$0xff]   ;;  %s2890_s24 = scalar_lea.vmem %s2160_s23, 64 }
  0x41   :  { %v2472_v37 = vld [vmem:[#allocation5 + $0xc4] ss:$8 sps:$4 sm:$0xff]   ;;  %v2474_v38 = vld [vmem:[#allocation5 + $0xc0] ss:$8 sps:$4 sm:$0xff]   ;;  %v2475_v39 = vld [vmem:[#allocation5 + $0xd4] ss:$8 sps:$4 sm:$0xff]   ;;  %p2891_p10 = scmp.ne.s32.totalorder %s2160_s23, %s2890_s24  ;;  %p2896_p12 = scmp.lt.s32.totalorder %s2890_s24, %s2890_s24 }
  0x42   :  { %v69_v16 = vsel %vm67_vm0, %v64_v13, 0.0  ;;  %314 = vmatpush1.bf16.msra.mxu0 %v2444_v17  ;;  %v2477_v40 = vld [vmem:[#allocation5 + $0xd0] ss:$8 sps:$4 sm:$0xff]   ;;  %v2478_v41 = vld [vmem:[#allocation5 + $0xe4] ss:$8 sps:$4 sm:$0xff]  }
  0x43   :  { %v70_v18 = vadd.f32 %v69_v16, %v68_v14  ;;  %315 = vmatprep.subr.bf16.mxu0 %v2445_v19  ;;  %v2480_v42 = vld [vmem:[#allocation5 + $0xe0] ss:$8 sps:$4 sm:$0xff]   ;;  %v2481_v43 = vld [vmem:[#allocation5 + $0xf4] ss:$8 sps:$4 sm:$0xff]   ;;  %v2483_v44 = vld [vmem:[#allocation5 + $0xf0] ss:$8 sps:$4 sm:$0xff]   ;;  %p2897_p13 = por %p2896_p12, %p2895_p11 }
  0x44   :  { %v2484_v45 = vld [vmem:[#allocation5 + $0x104] ss:$8 sps:$4 sm:$0xff]   ;;  %v2486_v46 = vld [vmem:[#allocation5 + $0x100] ss:$8 sps:$4 sm:$0xff]   ;;  %v2487_v47 = vld [vmem:[#allocation5 + $0x114] ss:$8 sps:$4 sm:$0xff]  }
  0x45   :  { %71 = vadd.xlane.f32.xlu0 %v70_v18  ;;  %564 = vmatprep.subr.bf16.mxu1 %v2484_v45  ;;  %v2489_v48 = vld [vmem:[#allocation5 + $0x110] ss:$8 sps:$4 sm:$0xff]   ;;  %v2490_v49 = vld [vmem:[#allocation5 + $0x124] ss:$8 sps:$4 sm:$0xff]   ;;  %v2492_v50 = vld [vmem:[#allocation5 + $0x120] ss:$8 sps:$4 sm:$0xff]   ;;  %p2898_p0 = pnand %p2897_p13, %p2891_p10 }
  0x46   :  { %316 = vmatpush1.bf16.msra.mxu0 %v2447_v20  ;;  %565 = vmatpush1.bf16.msra.mxu1 %v2486_v46  ;;  %v2493_v51 = vld [vmem:[#allocation5 + $0x134] ss:$8 sps:$4 sm:$0xff]   ;;  %v2495_v52 = vld [vmem:[#allocation5 + $0x130] ss:$8 sps:$4 sm:$0xff]   ;;  %v2496_v53 = vld [vmem:[#allocation5 + $0x144] ss:$8 sps:$4 sm:$0xff]  }
  0x47   :  { %317 = vmatprep.subr.bf16.mxu0 %v2448_v21  ;;  %566 = vmatprep.subr.bf16.mxu1 %v2487_v47  ;;  %v2498_v54 = vld [vmem:[#allocation5 + $0x140] ss:$8 sps:$4 sm:$0xff]   ;;  %v2499_v55 = vld [vmem:[#allocation5 + $0x154] ss:$8 sps:$4 sm:$0xff]   ;;  %v2501_v56 = vld [vmem:[#allocation5 + $0x150] ss:$8 sps:$4 sm:$0xff]  }
  0x48   :  { %v2502_v57 = vld [vmem:[#allocation5 + $0x164] ss:$8 sps:$4 sm:$0xff]   ;;  %v2504_v58 = vld [vmem:[#allocation5 + $0x160] ss:$8 sps:$4 sm:$0xff]   ;;  %v2505_v59 = vld [vmem:[#allocation5 + $0x174] ss:$8 sps:$4 sm:$0xff]  }
  0x49   :  { %v2507_v60 = vld [vmem:[#allocation5 + $0x170] ss:$8 sps:$4 sm:$0xff]   ;;  %v2508_v61 = vld [vmem:[#allocation5 + $0x184] ss:$8 sps:$4 sm:$0xff]   ;;  %v2510_v62 = vld [vmem:[#allocation5 + $0x180] ss:$8 sps:$4 sm:$0xff]  }
  0x4a   :  { %318 = vmatpush1.bf16.msra.mxu0 %v2450_v22  ;;  %567 = vmatpush1.bf16.msra.mxu1 %v2489_v48  ;;  %v2511_v63 = vld [vmem:[#allocation5 + $0x194] ss:$8 sps:$4 sm:$0xff]   ;;  %v2513_v0 = vld [vmem:[#allocation5 + $0x190] ss:$8 sps:$4 sm:$0xff]   ;;  %v2514_v1 = vld [vmem:[#allocation5 + $0x1a4] ss:$8 sps:$4 sm:$0xff]  }
  0x4b   :  { %319 = vmatprep.subr.bf16.mxu0 %v2451_v23  ;;  %568 = vmatprep.subr.bf16.mxu1 %v2490_v49  ;;  %v2516_v2 = vld [vmem:[#allocation5 + $0x1a0] ss:$8 sps:$4 sm:$0xff]   ;;  %v2517_v4 = vld [vmem:[#allocation5 + $0x1b4] ss:$8 sps:$4 sm:$0xff]   ;;  %v2519_v7 = vld [vmem:[#allocation5 + $0x1b0] ss:$8 sps:$4 sm:$0xff]  }
  0x4c   :  { %v2520_v8 = vld [vmem:[#allocation5 + $0x1c4] ss:$8 sps:$4 sm:$0xff]   ;;  %v2522_v9 = vld [vmem:[#allocation5 + $0x1c0] ss:$8 sps:$4 sm:$0xff]   ;;  %v2523_v10 = vld [vmem:[#allocation5 + $0x1d4] ss:$8 sps:$4 sm:$0xff]  }
  0x4d   :  { %v2525_v11 = vld [vmem:[#allocation5 + $0x1d0] ss:$8 sps:$4 sm:$0xff]   ;;  %v2926_v13 = vmov 269488144   ;;  %v2550_v45 = vld [vmem:[#allocation5 + $0x260] ss:$8 sps:$4 sm:$0xff]  }
  0x4e   :  { %320 = vmatpush1.bf16.msra.mxu0 %v2453_v24  ;;  %569 = vmatpush1.bf16.msra.mxu1 %v2492_v50  ;;  %v83_v14 = vunpack.c.l.s4 %v2926_v13  ;;  %v2555_v46 = vld [vmem:[#allocation5 + $0x274] ss:$8 sps:$4 sm:$0xff]   ;;  %v2553_v47 = vld [vmem:[#allocation5 + $0x270] ss:$8 sps:$4 sm:$0xff]   ;;  %v2558_v48 = vld [vmem:[#allocation5 + $0x284] ss:$8 sps:$4 sm:$0xff]  }
  0x4f   :  { %321 = vmatprep.subr.bf16.mxu0 %v2454_v25  ;;  %570 = vmatprep.subr.bf16.mxu1 %v2493_v51  ;;  %v2556_v49 = vld [vmem:[#allocation5 + $0x280] ss:$8 sps:$4 sm:$0xff]   ;;  %v2561_v50 = vld [vmem:[#allocation5 + $0x294] ss:$8 sps:$4 sm:$0xff]   ;;  %v2559_v51 = vld [vmem:[#allocation5 + $0x290] ss:$8 sps:$4 sm:$0xff]  }
  0x50   :  { %v84_v15 = vunpack.c.0.s8 %v83_v14 }
  0x52   :  { %322 = vmatpush1.bf16.msra.mxu0 %v2456_v26  ;;  %571 = vmatpush1.bf16.msra.mxu1 %v2495_v52  ;;  %v87_v20 = vsub.s32 %v84_v15, %v2984_v3  ;;  %v2564_v52 = vld [vmem:[#allocation5 + $0x2a4] ss:$8 sps:$4 sm:$0xff]  }
  0x53   :  { %323 = vmatprep.subr.bf16.mxu0 %v2457_v27  ;;  %572 = vmatprep.subr.bf16.mxu1 %v2496_v53  ;;  %v2562_v53 = vld [vmem:[#allocation5 + $0x2a0] ss:$8 sps:$4 sm:$0xff]   ;;  %v2576_v15 = vld [vmem:[#allocation5 + $0x2e4] ss:$8 sps:$4 sm:$0xff]  }
  0x56   :  { %324 = vmatpush1.bf16.msra.mxu0 %v2459_v28  ;;  %573 = vmatpush1.bf16.msra.mxu1 %v2498_v54  ;;  %v2567_v54 = vld [vmem:[#allocation5 + $0x2b4] ss:$8 sps:$4 sm:$0xff]  }
  0x57   :  { %325 = vmatprep.subr.bf16.mxu0 %v2460_v29  ;;  %574 = vmatprep.subr.bf16.mxu1 %v2499_v55  ;;  %v2565_v55 = vld [vmem:[#allocation5 + $0x2b0] ss:$8 sps:$4 sm:$0xff]  }
  0x5a   :  { %326 = vmatpush1.bf16.msra.mxu0 %v2462_v30  ;;  %575 = vmatpush1.bf16.msra.mxu1 %v2501_v56  ;;  %v2526_v30 = vld [vmem:[#allocation5 + $0x1e4] ss:$8 sps:$4 sm:$0xff]  }
  0x5b   :  { %327 = vmatprep.subr.bf16.mxu0 %v2463_v31  ;;  %576 = vmatprep.subr.bf16.mxu1 %v2502_v57  ;;  %v2528_v31 = vld [vmem:[#allocation5 + $0x1e0] ss:$8 sps:$4 sm:$0xff]   ;;  %v2570_v56 = vld [vmem:[#allocation5 + $0x2c4] ss:$8 sps:$4 sm:$0xff]  }
  0x5c   :  { %v2568_v57 = vld [vmem:[#allocation5 + $0x2c0] ss:$8 sps:$4 sm:$0xff]  }
  0x5e   :  { %328 = vmatpush1.bf16.msra.mxu0 %v2465_v32  ;;  %577 = vmatpush1.bf16.msra.mxu1 %v2504_v58  ;;  %v2529_v32 = vld [vmem:[#allocation5 + $0x1f4] ss:$8 sps:$4 sm:$0xff]  }
  0x5f   :  { %329 = vmatprep.subr.bf16.mxu0 %v2466_v33  ;;  %578 = vmatprep.subr.bf16.mxu1 %v2505_v59  ;;  %v2531_v33 = vld [vmem:[#allocation5 + $0x1f0] ss:$8 sps:$4 sm:$0xff]   ;;  %v2573_v58 = vld [vmem:[#allocation5 + $0x2d4] ss:$8 sps:$4 sm:$0xff]  }
  0x60   :  { %v2571_v59 = vld [vmem:[#allocation5 + $0x2d0] ss:$8 sps:$4 sm:$0xff]  }
  0x62   :  { %330 = vmatpush1.bf16.msra.mxu0 %v2468_v34  ;;  %579 = vmatpush1.bf16.msra.mxu1 %v2507_v60  ;;  %v2532_v34 = vld [vmem:[#allocation5 + $0x200] ss:$8 sps:$4 sm:$0xff]   ;;  %v2998_v60 = vsub.s32 0, %v2984_v3 }
  0x63   :  { %331 = vmatprep.subr.bf16.mxu0 %v2469_v35  ;;  %580 = vmatprep.subr.bf16.mxu1 %v2508_v61  ;;  %v2534_v35 = vld [vmem:[#allocation5 + $0x204] ss:$8 sps:$4 sm:$0xff]   ;;  %v3001_v61 = vsub.s32 1, %v2984_v3 }
  0x66   :  { %332 = vmatpush1.bf16.msra.mxu0 %v2471_v36  ;;  %581 = vmatpush1.bf16.msra.mxu1 %v2510_v62  ;;  %v2537_v36 = vld [vmem:[#allocation5 + $0x214] ss:$8 sps:$4 sm:$0xff]   ;;  %v137_v62 = vld [vmem:[#allocation7] sm:$0x3] }
  0x67   :  { %333 = vmatprep.subr.bf16.mxu0 %v2472_v37  ;;  %582 = vmatprep.subr.bf16.mxu1 %v2511_v63  ;;  %v2538_v37 = vld [vmem:[#allocation5 + $0x220] ss:$8 sps:$4 sm:$0xff]   ;;  %v142_v63 = vrot.slane %v137_v62, %v2998_v60 }
  0x6a   :  { %334 = vmatpush1.bf16.msra.mxu0 %v2474_v38  ;;  %583 = vmatpush1.bf16.msra.mxu1 %v2513_v0  ;;  %v2543_v38 = vld [vmem:[#allocation5 + $0x234] ss:$8 sps:$4 sm:$0xff]   ;;  %v146_v0 = vrot.slane %v137_v62, %v3001_v61  ;;  %v2624_v62 = vld [vmem:[#allocation5 + $0x3e4] ss:$8 sps:$4 sm:$0xff]  }
  0x6b   :  { %335 = vmatprep.subr.bf16.mxu0 %v2475_v39  ;;  %584 = vmatprep.subr.bf16.mxu1 %v2514_v1  ;;  %v2541_v39 = vld [vmem:[#allocation5 + $0x230] ss:$8 sps:$4 sm:$0xff]  }
  0x6e   :  { %336 = vmatpush1.bf16.msra.mxu0 %v2477_v40  ;;  %585 = vmatpush1.bf16.msra.mxu1 %v2516_v2  ;;  %v2546_v40 = vld [vmem:[#allocation5 + $0x244] ss:$8 sps:$4 sm:$0xff]  }
  0x6f   :  { %337 = vmatprep.subr.bf16.mxu0 %v2478_v41  ;;  %586 = vmatprep.subr.bf16.mxu1 %v2517_v4  ;;  %v2544_v41 = vld [vmem:[#allocation5 + $0x240] ss:$8 sps:$4 sm:$0xff]  }
  0x72   :  { %338 = vmatpush1.bf16.msra.mxu0 %v2480_v42  ;;  %587 = vmatpush1.bf16.msra.mxu1 %v2519_v7  ;;  %v2549_v42 = vld [vmem:[#allocation5 + $0x254] ss:$8 sps:$4 sm:$0xff]  }
  0x73   :  { %339 = vmatprep.subr.bf16.mxu0 %v2481_v43  ;;  %588 = vmatprep.subr.bf16.mxu1 %v2520_v8  ;;  %v2547_v43 = vld [vmem:[#allocation5 + $0x250] ss:$8 sps:$4 sm:$0xff]  }
  0x76   :  { %340 = vmatpush1.bf16.msra.mxu0 %v2483_v44  ;;  %589 = vmatpush1.bf16.msra.mxu1 %v2522_v9  ;;  %v2552_v44 = vld [vmem:[#allocation5 + $0x264] ss:$8 sps:$4 sm:$0xff]  }
  0x77   :  { %590 = vmatprep.subr.bf16.mxu1 %v2523_v10  ;;  %819 = vmatprep.subr.bf16.mxu0 %v2534_v35  ;;  %v2606_v35 = vld [vmem:[#allocation5 + $0x384] ss:$8 sps:$4 sm:$0xff]  }
  0x7a   :  { %591 = vmatpush1.bf16.msra.mxu1 %v2525_v11 }
  0x7b   :  { %592 = vmatprep.subr.bf16.mxu1 %v2526_v30  ;;  %v2595_v30 = vld [vmem:[#allocation5 + $0x350] ss:$8 sps:$4 sm:$0xff]  }
  0x7e   :  { %593 = vmatpush1.bf16.msra.mxu1 %v2528_v31  ;;  %v2600_v31 = vld [vmem:[#allocation5 + $0x364] ss:$8 sps:$4 sm:$0xff]  }
  0x7f   :  { %594 = vmatprep.subr.bf16.mxu1 %v2529_v32  ;;  %v2598_v32 = vld [vmem:[#allocation5 + $0x360] ss:$8 sps:$4 sm:$0xff]  }
  0x82   :  { %595 = vmatpush1.bf16.msra.mxu1 %v2531_v33  ;;  %v2603_v33 = vld [vmem:[#allocation5 + $0x374] ss:$8 sps:$4 sm:$0xff]  }
  0xd2   :  { %v72_v12 = vpop.xlane.xlu0 %71 }
  0xd3   :  { %2820 = vrsqrt.f32 %v72_v12  ;;  %vm75_vm1 = vcmp.eq.f32.partialorder %v72_v12, inf  ;;  %v78_v18 = vand.u32 2147483648, %v72_v12  ;;  %vm77_vm2 = vcmp.eq.f32.partialorder %v72_v12, 0.0 }
  0xdd   :  { %v2821_v16 = vpop.eup %2820 }
  0xde   :  { %v74_v17 = vmul.f32 %v2821_v16, %v72_v12  ;;  %v2574_v16 = vld [vmem:[#allocation5 + $0x2e0] ss:$8 sps:$4 sm:$0xff]  }
  0xe0   :  { %v76_v19 = vsel %vm75_vm1, %v72_v12, %v74_v17  ;;  %v2579_v17 = vld [vmem:[#allocation5 + $0x2f4] ss:$8 sps:$4 sm:$0xff]  }
  0xe1   :  { %v79_v21 = vsel %vm77_vm2, %v78_v18, %v76_v19  ;;  %v2577_v18 = vld [vmem:[#allocation5 + $0x2f0] ss:$8 sps:$4 sm:$0xff]   ;;  %v2580_v19 = vld [vmem:[#allocation5 + $0x300] ss:$8 sps:$4 sm:$0xff]  }
  0xe2   :  { %v80_v22 = vmax.f32 %v79_v21, 1e-12  ;;  %v2585_v21 = vld [vmem:[#allocation5 + $0x314] ss:$8 sps:$4 sm:$0xff]  }
  0xe4   :  { %v88_v23 = vrot.slane %v80_v22, %v87_v20  ;;  %v2582_v20 = vld [vmem:[#allocation5 + $0x304] ss:$8 sps:$4 sm:$0xff]   ;;  %v2583_v22 = vld [vmem:[#allocation5 + $0x310] ss:$8 sps:$4 sm:$0xff]  }
  0xe5   :  { %1074 = vmatprep.subr.bf16.mxu1 %v2582_v20  ;;  %v2654_v20 = vld [vmem:[#allocation5 + $0x484] ss:$8 sps:$4 sm:$0xff]  }
  0xe6   :  { %2822 = vrcp.f32 %v88_v23  ;;  %v2588_v23 = vld [vmem:[#allocation5 + $0x324] ss:$8 sps:$4 sm:$0xff]  }
  0xf0   :  { %v2823_v24 = vpop.eup %2822 }
  0xf1   :  { %v91_v25 = vmul.f32 %v2823_v24, %v2989_v6  ;;  %v2535_v6 = vld [vmem:[#allocation5 + $0x210] ss:$8 sps:$4 sm:$0xff]   ;;  %v2586_v24 = vld [vmem:[#allocation5 + $0x320] ss:$8 sps:$4 sm:$0xff]  }
  0xf3   :  { %v99_v26 = vrot.slane %v91_v25, %v2987_v5  ;;  %v2540_v5 = vld [vmem:[#allocation5 + $0x224] ss:$8 sps:$4 sm:$0xff]   ;;  %v2591_v25 = vld [vmem:[#allocation5 + $0x334] ss:$8 sps:$4 sm:$0xff]  }
  0xf5   :  { %v100_v27 = vcombine.high %v99_v26, %v99_v26  ;;  %v103_v29 = vpack.c.bf16 %v99_v26, %v99_v26  ;;  %v2589_v26 = vld [vmem:[#allocation5 + $0x330] ss:$8 sps:$4 sm:$0xff]  }
  0xf7   :  { %v104_v28 = vpack.c.bf16 %v100_v27, %v100_v27  ;;  %v2594_v27 = vld [vmem:[#allocation5 + $0x344] ss:$8 sps:$4 sm:$0xff]  }
  0xf9   :  { %341 = vmatprep.mubr.bf16.mxu0 %v104_v28  ;;  %v2592_v28 = vld [vmem:[#allocation5 + $0x340] ss:$8 sps:$4 sm:$0xff]  }
  0xfa   :  { %342 = vmatmul.mubr.bf16.vlgmr.msra.gmra.mrb[0].mxu0 %v103_v29  ;;  %v2597_v29 = vld [vmem:[#allocation5 + $0x354] ss:$8 sps:$4 sm:$0xff]  }
  0xfb   :  { %820 = vmatpush1.bf16.msra.mxu0 %v2532_v34  ;;  %v2601_v34 = vld [vmem:[#allocation5 + $0x370] ss:$8 sps:$4 sm:$0xff]  }
  0xfc   :  { %821 = vmatprep.subr.bf16.mxu0 %v2537_v36  ;;  %v2604_v36 = vld [vmem:[#allocation5 + $0x380] ss:$8 sps:$4 sm:$0xff]  }
  0xff   :  { %822 = vmatpush1.bf16.msra.mxu0 %v2535_v6  ;;  %v2609_v6 = vld [vmem:[#allocation5 + $0x394] ss:$8 sps:$4 sm:$0xff]  }
 0x100   :  { %823 = vmatprep.subr.bf16.mxu0 %v2540_v5  ;;  %v2607_v5 = vld [vmem:[#allocation5 + $0x390] ss:$8 sps:$4 sm:$0xff]  }
 0x103   :  { %824 = vmatpush1.bf16.msra.mxu0 %v2538_v37  ;;  %v2612_v37 = vld [vmem:[#allocation5 + $0x3a4] ss:$8 sps:$4 sm:$0xff]  }
 0x104   :  { %825 = vmatprep.subr.bf16.mxu0 %v2543_v38  ;;  %v2610_v38 = vld [vmem:[#allocation5 + $0x3a0] ss:$8 sps:$4 sm:$0xff]  }
 0x107   :  { %826 = vmatpush1.bf16.msra.mxu0 %v2541_v39  ;;  %v2615_v39 = vld [vmem:[#allocation5 + $0x3b4] ss:$8 sps:$4 sm:$0xff]  }
 0x108   :  { %827 = vmatprep.subr.bf16.mxu0 %v2546_v40  ;;  %v2613_v40 = vld [vmem:[#allocation5 + $0x3b0] ss:$8 sps:$4 sm:$0xff]  }
 0x10b   :  { %828 = vmatpush1.bf16.msra.mxu0 %v2544_v41  ;;  %v2618_v41 = vld [vmem:[#allocation5 + $0x3c4] ss:$8 sps:$4 sm:$0xff]  }
 0x10c   :  { %829 = vmatprep.subr.bf16.mxu0 %v2549_v42  ;;  %v2616_v42 = vld [vmem:[#allocation5 + $0x3c0] ss:$8 sps:$4 sm:$0xff]  }
 0x10f   :  { %830 = vmatpush1.bf16.msra.mxu0 %v2547_v43  ;;  %v2621_v43 = vld [vmem:[#allocation5 + $0x3d4] ss:$8 sps:$4 sm:$0xff]  }
 0x110   :  { %831 = vmatprep.subr.bf16.mxu0 %v2552_v44  ;;  %v2619_v44 = vld [vmem:[#allocation5 + $0x3d0] ss:$8 sps:$4 sm:$0xff]  }
 0x113   :  { %832 = vmatpush1.bf16.msra.mxu0 %v2550_v45  ;;  %v392_v45 = vld [vmem:[#allocation7 + $0x2] sm:$0x3] }
 0x114   :  { %833 = vmatprep.subr.bf16.mxu0 %v2555_v46  ;;  %v397_v46 = vrot.slane %v392_v45, %v2998_v60 }
 0x117   :  { %834 = vmatpush1.bf16.msra.mxu0 %v2553_v47  ;;  %v401_v47 = vrot.slane %v392_v45, %v3001_v61  ;;  %v2672_v45 = vld [vmem:[#allocation5 + $0x4e4] ss:$8 sps:$4 sm:$0xff]  }
 0x118   :  { %835 = vmatprep.subr.bf16.mxu0 %v2558_v48 }
 0x11b   :  { %836 = vmatpush1.bf16.msra.mxu0 %v2556_v49 }
 0x11c   :  { %837 = vmatprep.subr.bf16.mxu0 %v2561_v50 }
 0x11f   :  { %838 = vmatpush1.bf16.msra.mxu0 %v2559_v51 }
 0x120   :  { %839 = vmatprep.subr.bf16.mxu0 %v2564_v52 }
 0x123   :  { %840 = vmatpush1.bf16.msra.mxu0 %v2562_v53 }
 0x124   :  { %841 = vmatprep.subr.bf16.mxu0 %v2567_v54 }
 0x127   :  { %842 = vmatpush1.bf16.msra.mxu0 %v2565_v55 }
 0x128   :  { %843 = vmatprep.subr.bf16.mxu0 %v2570_v56 }
 0x12b   :  { %844 = vmatpush1.bf16.msra.mxu0 %v2568_v57 }
 0x12c   :  { %845 = vmatprep.subr.bf16.mxu0 %v2573_v58 }
 0x12f   :  { %846 = vmatpush1.bf16.msra.mxu0 %v2571_v59 }
 0x130   :  { %847 = vmatprep.subr.bf16.mxu0 %v2576_v15  ;;  %v2643_v15 = vld [vmem:[#allocation5 + $0x450] ss:$8 sps:$4 sm:$0xff]  }
 0x133   :  { %848 = vmatpush1.bf16.msra.mxu0 %v2574_v16  ;;  %v2648_v16 = vld [vmem:[#allocation5 + $0x464] ss:$8 sps:$4 sm:$0xff]  }
 0x134   :  { %849 = vmatprep.subr.bf16.mxu0 %v2579_v17  ;;  %v2646_v17 = vld [vmem:[#allocation5 + $0x460] ss:$8 sps:$4 sm:$0xff]  }
 0x137   :  { %850 = vmatpush1.bf16.msra.mxu0 %v2577_v18  ;;  %v2651_v18 = vld [vmem:[#allocation5 + $0x474] ss:$8 sps:$4 sm:$0xff]  }
 0x1cd   :  { %v343_v1 = vpop.f32.mrb[0].mxu0 }
 0x1ce   :  { %v344_v2 = vadd.f32 %v343_v1, %v142_v63  ;;  %v345_v4 = vpop.f32.mrb[1].mxu0  ;;  %v2622_v63 = vld [vmem:[#allocation5 + $0x3e0] ss:$8 sps:$4 sm:$0xff]   ;;  %v2625_v1 = vld [vmem:[#allocation5 + $0x3f0] ss:$8 sps:$4 sm:$0xff]  }
 0x1cf   :  { %v346_v7 = vadd.f32 %v345_v4, %v146_v0  ;;  %v347_v8 = vpop.f32.mrb[2].mxu0  ;;  %v2627_v0 = vld [vmem:[#allocation5 + $0x3f4] ss:$8 sps:$4 sm:$0xff]   ;;  %v2630_v4 = vld [vmem:[#allocation5 + $0x404] ss:$8 sps:$4 sm:$0xff]  }
 0x1d0   :  { %vm350_vm3 = vcmp.ge.f32.partialorder %v344_v2, 0.0  ;;  %v352_v9 = vmul.f32 0.2, %v344_v2  ;;  %v348_v10 = vpop.f32.mrb[3].mxu0  ;;  %1329 = vmatprep.subr.bf16.mxu0 %v2630_v4  ;;  %v2631_v8 = vld [vmem:[#allocation5 + $0x410] ss:$8 sps:$4 sm:$0xff]  }
 0x1d1   :  { %vm351_vm4 = vcmp.ge.f32.partialorder %v346_v7, 0.0  ;;  %v353_v11 = vmul.f32 0.2, %v346_v7  ;;  %v2634_v10 = vld [vmem:[#allocation5 + $0x420] ss:$8 sps:$4 sm:$0xff]  }
 0x1d2   :  { %v354_v12 = vsel %vm350_vm3, %v344_v2, %v352_v9  ;;  %v2628_v2 = vld [vmem:[#allocation5 + $0x400] ss:$8 sps:$4 sm:$0xff]   ;;  %v2636_v9 = vld [vmem:[#allocation5 + $0x424] ss:$8 sps:$4 sm:$0xff]  }
 0x1d3   :  { %v355_v13 = vsel %vm351_vm4, %v346_v7, %v353_v11  ;;  %v356_v3 = vpack.c.bf16 %v354_v12, %v354_v12  ;;  %v2633_v7 = vld [vmem:[#allocation5 + $0x414] ss:$8 sps:$4 sm:$0xff]   ;;  %v2637_v12 = vld [vmem:[#allocation5 + $0x430] ss:$8 sps:$4 sm:$0xff]   ;;  %v2702_v4 = vld [vmem:[#allocation5 + $0x584] ss:$8 sps:$4 sm:$0xff]  }
 0x1d4   :  { %v357_v14 = vpack.c.bf16 %v355_v13, %v355_v13  ;;  %v2639_v11 = vld [vmem:[#allocation5 + $0x434] ss:$8 sps:$4 sm:$0xff]   ;;  %v2642_v13 = vld [vmem:[#allocation5 + $0x444] ss:$8 sps:$4 sm:$0xff]  }
 0x1d6   :  { %596 = vmatprep.mubr.bf16.mxu1 %v357_v14  ;;  %v2640_v14 = vld [vmem:[#allocation5 + $0x440] ss:$8 sps:$4 sm:$0xff]  }
 0x1d7   :  { %597 = vmatmul.mubr.bf16.vlgmr.msra.gmra.mrb[0].mxu1 %v356_v3  ;;  %v2645_v3 = vld [vmem:[#allocation5 + $0x454] ss:$8 sps:$4 sm:$0xff]  }
 0x1d8   :  { %1075 = vmatpush1.bf16.msra.mxu1 %v2580_v19  ;;  %v2649_v19 = vld [vmem:[#allocation5 + $0x470] ss:$8 sps:$4 sm:$0xff]  }
 0x1d9   :  { %1076 = vmatprep.subr.bf16.mxu1 %v2585_v21  ;;  %v2652_v21 = vld [vmem:[#allocation5 + $0x480] ss:$8 sps:$4 sm:$0xff]  }
 0x1dc   :  { %1077 = vmatpush1.bf16.msra.mxu1 %v2583_v22  ;;  %v2657_v22 = vld [vmem:[#allocation5 + $0x494] ss:$8 sps:$4 sm:$0xff]  }
 0x1dd   :  { %1078 = vmatprep.subr.bf16.mxu1 %v2588_v23  ;;  %v2655_v23 = vld [vmem:[#allocation5 + $0x490] ss:$8 sps:$4 sm:$0xff]  }
 0x1e0   :  { %1079 = vmatpush1.bf16.msra.mxu1 %v2586_v24  ;;  %v2660_v24 = vld [vmem:[#allocation5 + $0x4a4] ss:$8 sps:$4 sm:$0xff]  }
 0x1e1   :  { %1080 = vmatprep.subr.bf16.mxu1 %v2591_v25  ;;  %v2658_v25 = vld [vmem:[#allocation5 + $0x4a0] ss:$8 sps:$4 sm:$0xff]  }
 0x1e4   :  { %1081 = vmatpush1.bf16.msra.mxu1 %v2589_v26  ;;  %v2663_v26 = vld [vmem:[#allocation5 + $0x4b4] ss:$8 sps:$4 sm:$0xff]  }
 0x1e5   :  { %1082 = vmatprep.subr.bf16.mxu1 %v2594_v27  ;;  %v2661_v27 = vld [vmem:[#allocation5 + $0x4b0] ss:$8 sps:$4 sm:$0xff]  }
 0x1e8   :  { %1083 = vmatpush1.bf16.msra.mxu1 %v2592_v28  ;;  %v2666_v28 = vld [vmem:[#allocation5 + $0x4c4] ss:$8 sps:$4 sm:$0xff]  }
 0x1e9   :  { %1084 = vmatprep.subr.bf16.mxu1 %v2597_v29  ;;  %v2664_v29 = vld [vmem:[#allocation5 + $0x4c0] ss:$8 sps:$4 sm:$0xff]  }
 0x1ec   :  { %1085 = vmatpush1.bf16.msra.mxu1 %v2595_v30  ;;  %v2669_v30 = vld [vmem:[#allocation5 + $0x4d4] ss:$8 sps:$4 sm:$0xff]  }
 0x1ed   :  { %1086 = vmatprep.subr.bf16.mxu1 %v2600_v31  ;;  %v2667_v31 = vld [vmem:[#allocation5 + $0x4d0] ss:$8 sps:$4 sm:$0xff]  }
 0x1f0   :  { %1087 = vmatpush1.bf16.msra.mxu1 %v2598_v32  ;;  %v647_v32 = vld [vmem:[#allocation7 + $0x4] sm:$0x3] }
 0x1f1   :  { %1088 = vmatprep.subr.bf16.mxu1 %v2603_v33  ;;  %v652_v33 = vrot.slane %v647_v32, %v2998_v60 }
 0x1f4   :  { %1089 = vmatpush1.bf16.msra.mxu1 %v2601_v34  ;;  %v656_v34 = vrot.slane %v647_v32, %v3001_v61  ;;  %v2720_v32 = vld [vmem:[#allocation5 + $0x5e4] ss:$8 sps:$4 sm:$0xff]  }
 0x1f5   :  { %1090 = vmatprep.subr.bf16.mxu1 %v2606_v35 }
 0x1f8   :  { %1091 = vmatpush1.bf16.msra.mxu1 %v2604_v36 }
 0x1f9   :  { %1092 = vmatprep.subr.bf16.mxu1 %v2609_v6 }
 0x1fc   :  { %1093 = vmatpush1.bf16.msra.mxu1 %v2607_v5 }
 0x1fd   :  { %1094 = vmatprep.subr.bf16.mxu1 %v2612_v37 }
 0x200   :  { %1095 = vmatpush1.bf16.msra.mxu1 %v2610_v38 }
 0x201   :  { %1096 = vmatprep.subr.bf16.mxu1 %v2615_v39 }
 0x204   :  { %1097 = vmatpush1.bf16.msra.mxu1 %v2613_v40 }
 0x205   :  { %1098 = vmatprep.subr.bf16.mxu1 %v2618_v41 }
 0x208   :  { %1099 = vmatpush1.bf16.msra.mxu1 %v2616_v42 }
 0x209   :  { %1100 = vmatprep.subr.bf16.mxu1 %v2621_v43 }
 0x20c   :  { %1101 = vmatpush1.bf16.msra.mxu1 %v2619_v44 }
 0x20d   :  { %1102 = vmatprep.subr.bf16.mxu1 %v2624_v62  ;;  %v2691_v62 = vld [vmem:[#allocation5 + $0x550] ss:$8 sps:$4 sm:$0xff]  }
 0x210   :  { %1103 = vmatpush1.bf16.msra.mxu1 %v2622_v63  ;;  %v2696_v63 = vld [vmem:[#allocation5 + $0x564] ss:$8 sps:$4 sm:$0xff]  }
 0x211   :  { %1104 = vmatprep.subr.bf16.mxu1 %v2627_v0  ;;  %v2694_v0 = vld [vmem:[#allocation5 + $0x560] ss:$8 sps:$4 sm:$0xff]  }
 0x214   :  { %1105 = vmatpush1.bf16.msra.mxu1 %v2625_v1  ;;  %v2699_v1 = vld [vmem:[#allocation5 + $0x574] ss:$8 sps:$4 sm:$0xff]  }
 0x2aa   :  { %v598_v48 = vpop.f32.mrb[0].mxu1 }
 0x2ab   :  { %v599_v49 = vadd.f32 %v598_v48, %v397_v46  ;;  %v600_v50 = vpop.f32.mrb[1].mxu1  ;;  %v2670_v46 = vld [vmem:[#allocation5 + $0x4e0] ss:$8 sps:$4 sm:$0xff]   ;;  %v2673_v48 = vld [vmem:[#allocation5 + $0x4f0] ss:$8 sps:$4 sm:$0xff]  }
 0x2ac   :  { %v601_v51 = vadd.f32 %v600_v50, %v401_v47  ;;  %v602_v52 = vpop.f32.mrb[2].mxu1  ;;  %v2675_v47 = vld [vmem:[#allocation5 + $0x4f4] ss:$8 sps:$4 sm:$0xff]   ;;  %v2678_v50 = vld [vmem:[#allocation5 + $0x504] ss:$8 sps:$4 sm:$0xff]  }
 0x2ad   :  { %vm605_vm5 = vcmp.ge.f32.partialorder %v599_v49, 0.0  ;;  %v607_v53 = vmul.f32 0.2, %v599_v49  ;;  %v603_v54 = vpop.f32.mrb[3].mxu1  ;;  %1584 = vmatprep.subr.bf16.mxu1 %v2678_v50  ;;  %v2679_v52 = vld [vmem:[#allocation5 + $0x510] ss:$8 sps:$4 sm:$0xff]  }
 0x2ae   :  { %vm606_vm6 = vcmp.ge.f32.partialorder %v601_v51, 0.0  ;;  %v608_v55 = vmul.f32 0.2, %v601_v51  ;;  %v2682_v54 = vld [vmem:[#allocation5 + $0x520] ss:$8 sps:$4 sm:$0xff]  }
 0x2af   :  { %v609_v56 = vsel %vm605_vm5, %v599_v49, %v607_v53  ;;  %v2676_v49 = vld [vmem:[#allocation5 + $0x500] ss:$8 sps:$4 sm:$0xff]   ;;  %v2684_v53 = vld [vmem:[#allocation5 + $0x524] ss:$8 sps:$4 sm:$0xff]  }
 0x2b0   :  { %v610_v57 = vsel %vm606_vm6, %v601_v51, %v608_v55  ;;  %v611_v59 = vpack.c.bf16 %v609_v56, %v609_v56  ;;  %v2681_v51 = vld [vmem:[#allocation5 + $0x514] ss:$8 sps:$4 sm:$0xff]   ;;  %v2685_v56 = vld [vmem:[#allocation5 + $0x530] ss:$8 sps:$4 sm:$0xff]   ;;  %v2750_v50 = vld [vmem:[#allocation5 + $0x684] ss:$8 sps:$4 sm:$0xff]  }
 0x2b1   :  { %v612_v58 = vpack.c.bf16 %v610_v57, %v610_v57  ;;  %v2687_v55 = vld [vmem:[#allocation5 + $0x534] ss:$8 sps:$4 sm:$0xff]   ;;  %v2690_v57 = vld [vmem:[#allocation5 + $0x544] ss:$8 sps:$4 sm:$0xff]  }
 0x2b3   :  { %851 = vmatprep.mubr.bf16.mxu0 %v612_v58  ;;  %v2688_v58 = vld [vmem:[#allocation5 + $0x540] ss:$8 sps:$4 sm:$0xff]  }
 0x2b4   :  { %852 = vmatmul.mubr.bf16.vlgmr.msra.gmra.mrb[4].mxu0 %v611_v59  ;;  %v2693_v59 = vld [vmem:[#allocation5 + $0x554] ss:$8 sps:$4 sm:$0xff]  }
 0x2b5   :  { %1330 = vmatpush1.bf16.msra.mxu0 %v2628_v2  ;;  %v2697_v2 = vld [vmem:[#allocation5 + $0x570] ss:$8 sps:$4 sm:$0xff]  }
 0x2b6   :  { %1331 = vmatprep.subr.bf16.mxu0 %v2633_v7  ;;  %v2700_v7 = vld [vmem:[#allocation5 + $0x580] ss:$8 sps:$4 sm:$0xff]  }
 0x2b9   :  { %1332 = vmatpush1.bf16.msra.mxu0 %v2631_v8  ;;  %v2705_v8 = vld [vmem:[#allocation5 + $0x594] ss:$8 sps:$4 sm:$0xff]  }
 0x2ba   :  { %1333 = vmatprep.subr.bf16.mxu0 %v2636_v9  ;;  %v2703_v9 = vld [vmem:[#allocation5 + $0x590] ss:$8 sps:$4 sm:$0xff]  }
 0x2bd   :  { %1334 = vmatpush1.bf16.msra.mxu0 %v2634_v10  ;;  %v2708_v10 = vld [vmem:[#allocation5 + $0x5a4] ss:$8 sps:$4 sm:$0xff]  }
 0x2be   :  { %1335 = vmatprep.subr.bf16.mxu0 %v2639_v11  ;;  %v2706_v11 = vld [vmem:[#allocation5 + $0x5a0] ss:$8 sps:$4 sm:$0xff]  }
 0x2c1   :  { %1336 = vmatpush1.bf16.msra.mxu0 %v2637_v12  ;;  %v2711_v12 = vld [vmem:[#allocation5 + $0x5b4] ss:$8 sps:$4 sm:$0xff]  }
 0x2c2   :  { %1337 = vmatprep.subr.bf16.mxu0 %v2642_v13  ;;  %v2709_v13 = vld [vmem:[#allocation5 + $0x5b0] ss:$8 sps:$4 sm:$0xff]  }
 0x2c5   :  { %1338 = vmatpush1.bf16.msra.mxu0 %v2640_v14  ;;  %v2714_v14 = vld [vmem:[#allocation5 + $0x5c4] ss:$8 sps:$4 sm:$0xff]  }
 0x2c6   :  { %1339 = vmatprep.subr.bf16.mxu0 %v2645_v3  ;;  %v2712_v3 = vld [vmem:[#allocation5 + $0x5c0] ss:$8 sps:$4 sm:$0xff]  }
 0x2c9   :  { %1340 = vmatpush1.bf16.msra.mxu0 %v2643_v15  ;;  %v2717_v15 = vld [vmem:[#allocation5 + $0x5d4] ss:$8 sps:$4 sm:$0xff]  }
 0x2ca   :  { %1341 = vmatprep.subr.bf16.mxu0 %v2648_v16  ;;  %v2715_v16 = vld [vmem:[#allocation5 + $0x5d0] ss:$8 sps:$4 sm:$0xff]  }
 0x2cd   :  { %1342 = vmatpush1.bf16.msra.mxu0 %v2646_v17  ;;  %v902_v17 = vld [vmem:[#allocation7 + $0x6] sm:$0x3] }
 0x2ce   :  { %1343 = vmatprep.subr.bf16.mxu0 %v2651_v18  ;;  %v907_v18 = vrot.slane %v902_v17, %v2998_v60 }
 0x2d1   :  { %1344 = vmatpush1.bf16.msra.mxu0 %v2649_v19  ;;  %v911_v19 = vrot.slane %v902_v17, %v3001_v61  ;;  %v2768_v17 = vld [vmem:[#allocation5 + $0x6e4] ss:$8 sps:$4 sm:$0xff]  }
 0x2d2   :  { %1345 = vmatprep.subr.bf16.mxu0 %v2654_v20 }
 0x2d5   :  { %1346 = vmatpush1.bf16.msra.mxu0 %v2652_v21 }
 0x2d6   :  { %1347 = vmatprep.subr.bf16.mxu0 %v2657_v22 }
 0x2d9   :  { %1348 = vmatpush1.bf16.msra.mxu0 %v2655_v23 }
 0x2da   :  { %1349 = vmatprep.subr.bf16.mxu0 %v2660_v24 }
 0x2dd   :  { %1350 = vmatpush1.bf16.msra.mxu0 %v2658_v25 }
 0x2de   :  { %1351 = vmatprep.subr.bf16.mxu0 %v2663_v26 }
 0x2e1   :  { %1352 = vmatpush1.bf16.msra.mxu0 %v2661_v27 }
 0x2e2   :  { %1353 = vmatprep.subr.bf16.mxu0 %v2666_v28 }
 0x2e5   :  { %1354 = vmatpush1.bf16.msra.mxu0 %v2664_v29 }
 0x2e6   :  { %1355 = vmatprep.subr.bf16.mxu0 %v2669_v30 }
 0x2e9   :  { %1356 = vmatpush1.bf16.msra.mxu0 %v2667_v31 }
 0x2ea   :  { %1357 = vmatprep.subr.bf16.mxu0 %v2672_v45  ;;  %v2739_v45 = vld [vmem:[#allocation5 + $0x650] ss:$8 sps:$4 sm:$0xff]  }
 0x2ed   :  { %1358 = vmatpush1.bf16.msra.mxu0 %v2670_v46  ;;  %v2744_v46 = vld [vmem:[#allocation5 + $0x664] ss:$8 sps:$4 sm:$0xff]  }
 0x2ee   :  { %1359 = vmatprep.subr.bf16.mxu0 %v2675_v47  ;;  %v2742_v47 = vld [vmem:[#allocation5 + $0x660] ss:$8 sps:$4 sm:$0xff]  }
 0x2f1   :  { %1360 = vmatpush1.bf16.msra.mxu0 %v2673_v48  ;;  %v2747_v48 = vld [vmem:[#allocation5 + $0x674] ss:$8 sps:$4 sm:$0xff]  }
 0x387   :  { %v853_v35 = vpop.f32.mrb[4].mxu0 }
 0x388   :  { %v854_v36 = vadd.f32 %v853_v35, %v652_v33  ;;  %v855_v6 = vpop.f32.mrb[5].mxu0  ;;  %v2718_v33 = vld [vmem:[#allocation5 + $0x5e0] ss:$8 sps:$4 sm:$0xff]   ;;  %v2721_v35 = vld [vmem:[#allocation5 + $0x5f0] ss:$8 sps:$4 sm:$0xff]  }
 0x389   :  { %v856_v5 = vadd.f32 %v855_v6, %v656_v34  ;;  %v857_v37 = vpop.f32.mrb[6].mxu0  ;;  %v2723_v34 = vld [vmem:[#allocation5 + $0x5f4] ss:$8 sps:$4 sm:$0xff]   ;;  %v2726_v6 = vld [vmem:[#allocation5 + $0x604] ss:$8 sps:$4 sm:$0xff]  }
 0x38a   :  { %vm860_vm7 = vcmp.ge.f32.partialorder %v854_v36, 0.0  ;;  %v862_v38 = vmul.f32 0.2, %v854_v36  ;;  %v858_v39 = vpop.f32.mrb[7].mxu0  ;;  %1839 = vmatprep.subr.bf16.mxu0 %v2726_v6  ;;  %v2727_v37 = vld [vmem:[#allocation5 + $0x610] ss:$8 sps:$4 sm:$0xff]  }
 0x38b   :  { %vm861_vm8 = vcmp.ge.f32.partialorder %v856_v5, 0.0  ;;  %v863_v40 = vmul.f32 0.2, %v856_v5  ;;  %v2730_v39 = vld [vmem:[#allocation5 + $0x620] ss:$8 sps:$4 sm:$0xff]  }
 0x38c   :  { %v864_v41 = vsel %vm860_vm7, %v854_v36, %v862_v38  ;;  %v2724_v36 = vld [vmem:[#allocation5 + $0x600] ss:$8 sps:$4 sm:$0xff]   ;;  %v2732_v38 = vld [vmem:[#allocation5 + $0x624] ss:$8 sps:$4 sm:$0xff]  }
 0x38d   :  { %v865_v42 = vsel %vm861_vm8, %v856_v5, %v863_v40  ;;  %v866_v44 = vpack.c.bf16 %v864_v41, %v864_v41  ;;  %v2729_v5 = vld [vmem:[#allocation5 + $0x614] ss:$8 sps:$4 sm:$0xff]   ;;  %v2733_v41 = vld [vmem:[#allocation5 + $0x630] ss:$8 sps:$4 sm:$0xff]   ;;  %v2798_v6 = vld [vmem:[#allocation5 + $0x784] ss:$8 sps:$4 sm:$0xff]  }
 0x38e   :  { %v867_v43 = vpack.c.bf16 %v865_v42, %v865_v42  ;;  %v2735_v40 = vld [vmem:[#allocation5 + $0x634] ss:$8 sps:$4 sm:$0xff]   ;;  %v2738_v42 = vld [vmem:[#allocation5 + $0x644] ss:$8 sps:$4 sm:$0xff]  }
 0x390   :  { %1106 = vmatprep.mubr.bf16.mxu1 %v867_v43  ;;  %v2736_v43 = vld [vmem:[#allocation5 + $0x640] ss:$8 sps:$4 sm:$0xff]  }
 0x391   :  { %1107 = vmatmul.mubr.bf16.vlgmr.msra.gmra.mrb[4].mxu1 %v866_v44  ;;  %v2741_v44 = vld [vmem:[#allocation5 + $0x654] ss:$8 sps:$4 sm:$0xff]  }
 0x392   :  { %1585 = vmatpush1.bf16.msra.mxu1 %v2676_v49  ;;  %v2745_v49 = vld [vmem:[#allocation5 + $0x670] ss:$8 sps:$4 sm:$0xff]  }
 0x393   :  { %1586 = vmatprep.subr.bf16.mxu1 %v2681_v51  ;;  %v2748_v51 = vld [vmem:[#allocation5 + $0x680] ss:$8 sps:$4 sm:$0xff]  }
 0x396   :  { %1587 = vmatpush1.bf16.msra.mxu1 %v2679_v52  ;;  %v2753_v52 = vld [vmem:[#allocation5 + $0x694] ss:$8 sps:$4 sm:$0xff]  }
 0x397   :  { %1588 = vmatprep.subr.bf16.mxu1 %v2684_v53  ;;  %v2751_v53 = vld [vmem:[#allocation5 + $0x690] ss:$8 sps:$4 sm:$0xff]  }
 0x39a   :  { %1589 = vmatpush1.bf16.msra.mxu1 %v2682_v54  ;;  %v2756_v54 = vld [vmem:[#allocation5 + $0x6a4] ss:$8 sps:$4 sm:$0xff]  }
 0x39b   :  { %1590 = vmatprep.subr.bf16.mxu1 %v2687_v55  ;;  %v2754_v55 = vld [vmem:[#allocation5 + $0x6a0] ss:$8 sps:$4 sm:$0xff]  }
 0x39e   :  { %1591 = vmatpush1.bf16.msra.mxu1 %v2685_v56  ;;  %v2759_v56 = vld [vmem:[#allocation5 + $0x6b4] ss:$8 sps:$4 sm:$0xff]  }
 0x39f   :  { %1592 = vmatprep.subr.bf16.mxu1 %v2690_v57  ;;  %v2757_v57 = vld [vmem:[#allocation5 + $0x6b0] ss:$8 sps:$4 sm:$0xff]  }
 0x3a2   :  { %1593 = vmatpush1.bf16.msra.mxu1 %v2688_v58  ;;  %v2762_v58 = vld [vmem:[#allocation5 + $0x6c4] ss:$8 sps:$4 sm:$0xff]  }
 0x3a3   :  { %1594 = vmatprep.subr.bf16.mxu1 %v2693_v59  ;;  %v2760_v59 = vld [vmem:[#allocation5 + $0x6c0] ss:$8 sps:$4 sm:$0xff]  }
 0x3a6   :  { %1595 = vmatpush1.bf16.msra.mxu1 %v2691_v62  ;;  %v2765_v62 = vld [vmem:[#allocation5 + $0x6d4] ss:$8 sps:$4 sm:$0xff]  }
 0x3a7   :  { %1596 = vmatprep.subr.bf16.mxu1 %v2696_v63  ;;  %v2763_v63 = vld [vmem:[#allocation5 + $0x6d0] ss:$8 sps:$4 sm:$0xff]  }
 0x3aa   :  { %1597 = vmatpush1.bf16.msra.mxu1 %v2694_v0  ;;  %v1157_v0 = vld [vmem:[#allocation7 + $0x8] sm:$0x3] }
 0x3ab   :  { %1598 = vmatprep.subr.bf16.mxu1 %v2699_v1  ;;  %v1162_v1 = vrot.slane %v1157_v0, %v2998_v60 }
 0x3ae   :  { %1599 = vmatpush1.bf16.msra.mxu1 %v2697_v2  ;;  %v1166_v2 = vrot.slane %v1157_v0, %v3001_v61  ;;  %v2816_v0 = vld [vmem:[#allocation5 + $0x7e4] ss:$8 sps:$4 sm:$0xff]  }
 0x3af   :  { %1600 = vmatprep.subr.bf16.mxu1 %v2702_v4 }
 0x3b2   :  { %1601 = vmatpush1.bf16.msra.mxu1 %v2700_v7 }
 0x3b3   :  { %1602 = vmatprep.subr.bf16.mxu1 %v2705_v8 }
 0x3b6   :  { %1603 = vmatpush1.bf16.msra.mxu1 %v2703_v9 }
 0x3b7   :  { %1604 = vmatprep.subr.bf16.mxu1 %v2708_v10 }
 0x3ba   :  { %1605 = vmatpush1.bf16.msra.mxu1 %v2706_v11 }
 0x3bb   :  { %1606 = vmatprep.subr.bf16.mxu1 %v2711_v12 }
 0x3be   :  { %1607 = vmatpush1.bf16.msra.mxu1 %v2709_v13 }
 0x3bf   :  { %1608 = vmatprep.subr.bf16.mxu1 %v2714_v14 }
 0x3c2   :  { %1609 = vmatpush1.bf16.msra.mxu1 %v2712_v3 }
 0x3c3   :  { %1610 = vmatprep.subr.bf16.mxu1 %v2717_v15 }
 0x3c6   :  { %1611 = vmatpush1.bf16.msra.mxu1 %v2715_v16 }
 0x3c7   :  { %1612 = vmatprep.subr.bf16.mxu1 %v2720_v32  ;;  %v2787_v32 = vld [vmem:[#allocation5 + $0x750] ss:$8 sps:$4 sm:$0xff]  }
 0x3ca   :  { %1613 = vmatpush1.bf16.msra.mxu1 %v2718_v33  ;;  %v2792_v33 = vld [vmem:[#allocation5 + $0x764] ss:$8 sps:$4 sm:$0xff]  }
 0x3cb   :  { %1614 = vmatprep.subr.bf16.mxu1 %v2723_v34  ;;  %v2790_v34 = vld [vmem:[#allocation5 + $0x760] ss:$8 sps:$4 sm:$0xff]  }
 0x3ce   :  { %1615 = vmatpush1.bf16.msra.mxu1 %v2721_v35  ;;  %v2795_v35 = vld [vmem:[#allocation5 + $0x774] ss:$8 sps:$4 sm:$0xff]  }
 0x464   :  { %v1108_v20 = vpop.f32.mrb[4].mxu1 }
 0x465   :  { %v1109_v21 = vadd.f32 %v1108_v20, %v907_v18  ;;  %v1110_v22 = vpop.f32.mrb[5].mxu1  ;;  %v2766_v18 = vld [vmem:[#allocation5 + $0x6e0] ss:$8 sps:$4 sm:$0xff]   ;;  %v2769_v20 = vld [vmem:[#allocation5 + $0x6f0] ss:$8 sps:$4 sm:$0xff]  }
 0x466   :  { %v1111_v23 = vadd.f32 %v1110_v22, %v911_v19  ;;  %v1112_v24 = vpop.f32.mrb[6].mxu1  ;;  %v2771_v19 = vld [vmem:[#allocation5 + $0x6f4] ss:$8 sps:$4 sm:$0xff]   ;;  %v2774_v22 = vld [vmem:[#allocation5 + $0x704] ss:$8 sps:$4 sm:$0xff]  }
 0x467   :  { %vm1115_vm9 = vcmp.ge.f32.partialorder %v1109_v21, 0.0  ;;  %v1117_v25 = vmul.f32 0.2, %v1109_v21  ;;  %v1113_v26 = vpop.f32.mrb[7].mxu1  ;;  %2094 = vmatprep.subr.bf16.mxu1 %v2774_v22  ;;  %v2775_v24 = vld [vmem:[#allocation5 + $0x710] ss:$8 sps:$4 sm:$0xff]  }
 0x468   :  { %vm1116_vm10 = vcmp.ge.f32.partialorder %v1111_v23, 0.0  ;;  %v1118_v27 = vmul.f32 0.2, %v1111_v23  ;;  %v2778_v26 = vld [vmem:[#allocation5 + $0x720] ss:$8 sps:$4 sm:$0xff]  }
 0x469   :  { %v1119_v28 = vsel %vm1115_vm9, %v1109_v21, %v1117_v25  ;;  %v2772_v21 = vld [vmem:[#allocation5 + $0x700] ss:$8 sps:$4 sm:$0xff]   ;;  %v2780_v25 = vld [vmem:[#allocation5 + $0x724] ss:$8 sps:$4 sm:$0xff]  }
 0x46a   :  { %v1120_v29 = vsel %vm1116_vm10, %v1111_v23, %v1118_v27  ;;  %v1121_v31 = vpack.c.bf16 %v1119_v28, %v1119_v28  ;;  %v2777_v23 = vld [vmem:[#allocation5 + $0x714] ss:$8 sps:$4 sm:$0xff]   ;;  %v2781_v28 = vld [vmem:[#allocation5 + $0x730] ss:$8 sps:$4 sm:$0xff]  }
 0x46b   :  { %v1122_v30 = vpack.c.bf16 %v1120_v29, %v1120_v29  ;;  %v2783_v27 = vld [vmem:[#allocation5 + $0x734] ss:$8 sps:$4 sm:$0xff]   ;;  %v2786_v29 = vld [vmem:[#allocation5 + $0x744] ss:$8 sps:$4 sm:$0xff]  }
 0x46d   :  { %1361 = vmatprep.mubr.bf16.mxu0 %v1122_v30  ;;  %v2784_v30 = vld [vmem:[#allocation5 + $0x740] ss:$8 sps:$4 sm:$0xff]  }
 0x46e   :  { %1362 = vmatmul.mubr.bf16.vlgmr.msra.gmra.mrb[8].mxu0 %v1121_v31  ;;  %v2789_v31 = vld [vmem:[#allocation5 + $0x754] ss:$8 sps:$4 sm:$0xff]  }
 0x46f   :  { %1840 = vmatpush1.bf16.msra.mxu0 %v2724_v36  ;;  %v2793_v36 = vld [vmem:[#allocation5 + $0x770] ss:$8 sps:$4 sm:$0xff]  }
 0x470   :  { %1841 = vmatprep.subr.bf16.mxu0 %v2729_v5  ;;  %v2796_v5 = vld [vmem:[#allocation5 + $0x780] ss:$8 sps:$4 sm:$0xff]  }
 0x473   :  { %1842 = vmatpush1.bf16.msra.mxu0 %v2727_v37  ;;  %v2801_v37 = vld [vmem:[#allocation5 + $0x794] ss:$8 sps:$4 sm:$0xff]  }
 0x474   :  { %1843 = vmatprep.subr.bf16.mxu0 %v2732_v38  ;;  %v2799_v38 = vld [vmem:[#allocation5 + $0x790] ss:$8 sps:$4 sm:$0xff]  }
 0x477   :  { %1844 = vmatpush1.bf16.msra.mxu0 %v2730_v39  ;;  %v2804_v39 = vld [vmem:[#allocation5 + $0x7a4] ss:$8 sps:$4 sm:$0xff]  }
 0x478   :  { %1845 = vmatprep.subr.bf16.mxu0 %v2735_v40  ;;  %v2802_v40 = vld [vmem:[#allocation5 + $0x7a0] ss:$8 sps:$4 sm:$0xff]  }
 0x47b   :  { %1846 = vmatpush1.bf16.msra.mxu0 %v2733_v41  ;;  %v2807_v41 = vld [vmem:[#allocation5 + $0x7b4] ss:$8 sps:$4 sm:$0xff]  }
 0x47c   :  { %1847 = vmatprep.subr.bf16.mxu0 %v2738_v42  ;;  %v2805_v42 = vld [vmem:[#allocation5 + $0x7b0] ss:$8 sps:$4 sm:$0xff]  }
 0x47f   :  { %1848 = vmatpush1.bf16.msra.mxu0 %v2736_v43  ;;  %v2810_v43 = vld [vmem:[#allocation5 + $0x7c4] ss:$8 sps:$4 sm:$0xff]  }
 0x480   :  { %1849 = vmatprep.subr.bf16.mxu0 %v2741_v44  ;;  %v2808_v44 = vld [vmem:[#allocation5 + $0x7c0] ss:$8 sps:$4 sm:$0xff]  }
 0x483   :  { %1850 = vmatpush1.bf16.msra.mxu0 %v2739_v45  ;;  %v2813_v45 = vld [vmem:[#allocation5 + $0x7d4] ss:$8 sps:$4 sm:$0xff]  }
 0x484   :  { %1851 = vmatprep.subr.bf16.mxu0 %v2744_v46  ;;  %v2811_v46 = vld [vmem:[#allocation5 + $0x7d0] ss:$8 sps:$4 sm:$0xff]  }
 0x487   :  { %1852 = vmatpush1.bf16.msra.mxu0 %v2742_v47  ;;  %v1412_v47 = vld [vmem:[#allocation7 + $0xa] sm:$0x3] }
 0x488   :  { %1853 = vmatprep.subr.bf16.mxu0 %v2747_v48  ;;  %v1417_v48 = vrot.slane %v1412_v47, %v2998_v60 }
 0x48b   :  { %1854 = vmatpush1.bf16.msra.mxu0 %v2745_v49  ;;  %v1421_v49 = vrot.slane %v1412_v47, %v3001_v61 }
 0x48c   :  { %1855 = vmatprep.subr.bf16.mxu0 %v2750_v50 }
 0x48f   :  { %1856 = vmatpush1.bf16.msra.mxu0 %v2748_v51 }
 0x490   :  { %1857 = vmatprep.subr.bf16.mxu0 %v2753_v52 }
 0x493   :  { %1858 = vmatpush1.bf16.msra.mxu0 %v2751_v53 }
 0x494   :  { %1859 = vmatprep.subr.bf16.mxu0 %v2756_v54 }
 0x497   :  { %1860 = vmatpush1.bf16.msra.mxu0 %v2754_v55 }
 0x498   :  { %1861 = vmatprep.subr.bf16.mxu0 %v2759_v56 }
 0x49b   :  { %1862 = vmatpush1.bf16.msra.mxu0 %v2757_v57 }
 0x49c   :  { %1863 = vmatprep.subr.bf16.mxu0 %v2762_v58 }
 0x49f   :  { %1864 = vmatpush1.bf16.msra.mxu0 %v2760_v59 }
 0x4a0   :  { %1865 = vmatprep.subr.bf16.mxu0 %v2765_v62 }
 0x4a3   :  { %1866 = vmatpush1.bf16.msra.mxu0 %v2763_v63 }
 0x4a4   :  { %1867 = vmatprep.subr.bf16.mxu0 %v2768_v17 }
 0x4a7   :  { %1868 = vmatpush1.bf16.msra.mxu0 %v2766_v18 }
 0x4a8   :  { %1869 = vmatprep.subr.bf16.mxu0 %v2771_v19 }
 0x4ab   :  { %1870 = vmatpush1.bf16.msra.mxu0 %v2769_v20 }
 0x541   :  { %v1363_v4 = vpop.f32.mrb[8].mxu0 }
 0x542   :  { %v1364_v7 = vadd.f32 %v1363_v4, %v1162_v1  ;;  %v1365_v8 = vpop.f32.mrb[9].mxu0  ;;  %v2814_v1 = vld [vmem:[#allocation5 + $0x7e0] ss:$8 sps:$4 sm:$0xff]   ;;  %v2817_v4 = vld [vmem:[#allocation5 + $0x7f0] ss:$8 sps:$4 sm:$0xff]  }
 0x543   :  { %v1366_v9 = vadd.f32 %v1365_v8, %v1166_v2  ;;  %v1367_v10 = vpop.f32.mrb[10].mxu0  ;;  %v2819_v2 = vld [vmem:[#allocation5 + $0x7f4] ss:$8 sps:$4 sm:$0xff]  }
 0x544   :  { %vm1370_vm11 = vcmp.ge.f32.partialorder %v1364_v7, 0.0  ;;  %v1372_v11 = vmul.f32 0.2, %v1364_v7  ;;  %v1368_v12 = vpop.f32.mrb[11].mxu0 }
 0x545   :  { %vm1371_vm12 = vcmp.ge.f32.partialorder %v1366_v9, 0.0  ;;  %v1373_v13 = vmul.f32 0.2, %v1366_v9 }
 0x546   :  { %v1374_v14 = vsel %vm1370_vm11, %v1364_v7, %v1372_v11  ;;  %v1667_v7 = vld [vmem:[#allocation7 + $0xc] sm:$0x3] }
 0x547   :  { %v1375_v3 = vsel %vm1371_vm12, %v1366_v9, %v1373_v13  ;;  %v1376_v16 = vpack.c.bf16 %v1374_v14, %v1374_v14  ;;  %v1672_v8 = vrot.slane %v1667_v7, %v2998_v60  ;;  %v1676_v9 = vrot.slane %v1667_v7, %v3001_v61 }
 0x548   :  { %v1377_v15 = vpack.c.bf16 %v1375_v3, %v1375_v3 }
 0x54a   :  { %1616 = vmatprep.mubr.bf16.mxu1 %v1377_v15 }
 0x54b   :  { %1617 = vmatmul.mubr.bf16.vlgmr.msra.gmra.mrb[8].mxu1 %v1376_v16 }
 0x54c   :  { %2095 = vmatpush1.bf16.msra.mxu1 %v2772_v21  ;;  %v1922_v21 = vld [vmem:[#allocation7 + $0xe] sm:$0x3] }
 0x54d   :  { %2096 = vmatprep.subr.bf16.mxu1 %v2777_v23  ;;  %v1927_v22 = vrot.slane %v1922_v21, %v2998_v60  ;;  %v1931_v23 = vrot.slane %v1922_v21, %v3001_v61 }
 0x550   :  { %2097 = vmatpush1.bf16.msra.mxu1 %v2775_v24 }
 0x551   :  { %2098 = vmatprep.subr.bf16.mxu1 %v2780_v25 }
 0x554   :  { %2099 = vmatpush1.bf16.msra.mxu1 %v2778_v26 }
 0x555   :  { %2100 = vmatprep.subr.bf16.mxu1 %v2783_v27 }
 0x558   :  { %2101 = vmatpush1.bf16.msra.mxu1 %v2781_v28 }
 0x559   :  { %2102 = vmatprep.subr.bf16.mxu1 %v2786_v29 }
 0x55c   :  { %2103 = vmatpush1.bf16.msra.mxu1 %v2784_v30 }
 0x55d   :  { %2104 = vmatprep.subr.bf16.mxu1 %v2789_v31 }
 0x560   :  { %2105 = vmatpush1.bf16.msra.mxu1 %v2787_v32 }
 0x561   :  { %2106 = vmatprep.subr.bf16.mxu1 %v2792_v33 }
 0x564   :  { %2107 = vmatpush1.bf16.msra.mxu1 %v2790_v34 }
 0x565   :  { %2108 = vmatprep.subr.bf16.mxu1 %v2795_v35 }
 0x568   :  { %2109 = vmatpush1.bf16.msra.mxu1 %v2793_v36 }
 0x569   :  { %2110 = vmatprep.subr.bf16.mxu1 %v2798_v6 }
 0x56c   :  { %2111 = vmatpush1.bf16.msra.mxu1 %v2796_v5 }
 0x56d   :  { %2112 = vmatprep.subr.bf16.mxu1 %v2801_v37 }
 0x570   :  { %2113 = vmatpush1.bf16.msra.mxu1 %v2799_v38 }
 0x571   :  { %2114 = vmatprep.subr.bf16.mxu1 %v2804_v39 }
 0x574   :  { %2115 = vmatpush1.bf16.msra.mxu1 %v2802_v40 }
 0x575   :  { %2116 = vmatprep.subr.bf16.mxu1 %v2807_v41 }
 0x578   :  { %2117 = vmatpush1.bf16.msra.mxu1 %v2805_v42 }
 0x579   :  { %2118 = vmatprep.subr.bf16.mxu1 %v2810_v43 }
 0x57c   :  { %2119 = vmatpush1.bf16.msra.mxu1 %v2808_v44 }
 0x57d   :  { %2120 = vmatprep.subr.bf16.mxu1 %v2813_v45 }
 0x580   :  { %2121 = vmatpush1.bf16.msra.mxu1 %v2811_v46 }
 0x581   :  { %2122 = vmatprep.subr.bf16.mxu1 %v2816_v0 }
 0x584   :  { %2123 = vmatpush1.bf16.msra.mxu1 %v2814_v1 }
 0x585   :  { %2124 = vmatprep.subr.bf16.mxu1 %v2819_v2 }
 0x588   :  { %2125 = vmatpush1.bf16.msra.mxu1 %v2817_v4 }
 0x61e   :  { %v1618_v50 = vpop.f32.mrb[8].mxu1 }
 0x61f   :  { %v1619_v51 = vadd.f32 %v1618_v50, %v1417_v48  ;;  %v1620_v52 = vpop.f32.mrb[9].mxu1 }
 0x620   :  { %v1621_v53 = vadd.f32 %v1620_v52, %v1421_v49  ;;  %v1622_v54 = vpop.f32.mrb[10].mxu1 }
 0x621   :  { %vm1625_vm13 = vcmp.ge.f32.partialorder %v1619_v51, 0.0  ;;  %v1627_v55 = vmul.f32 0.2, %v1619_v51  ;;  %v1623_v56 = vpop.f32.mrb[11].mxu1 }
 0x622   :  { %vm1626_vm14 = vcmp.ge.f32.partialorder %v1621_v53, 0.0  ;;  %v1628_v57 = vmul.f32 0.2, %v1621_v53 }
 0x623   :  { %v1629_v58 = vsel %vm1625_vm13, %v1619_v51, %v1627_v55 }
 0x624   :  { %v1630_v59 = vsel %vm1626_vm14, %v1621_v53, %v1628_v57  ;;  %v1631_v63 = vpack.c.bf16 %v1629_v58, %v1629_v58 }
 0x625   :  { %v1632_v62 = vpack.c.bf16 %v1630_v59, %v1630_v59 }
 0x627   :  { %1871 = vmatprep.mubr.bf16.mxu0 %v1632_v62 }
 0x628   :  { %1872 = vmatmul.mubr.bf16.vlgmr.msra.gmra.mrb[12].mxu0 %v1631_v63 }
 0x6fb   :  { %v1873_v10 = vpop.f32.mrb[12].mxu0 }
 0x6fc   :  { %v1874_v11 = vadd.f32 %v1873_v10, %v1672_v8  ;;  %v1875_v12 = vpop.f32.mrb[13].mxu0 }
 0x6fd   :  { %v1876_v13 = vadd.f32 %v1875_v12, %v1676_v9  ;;  %v1877_v14 = vpop.f32.mrb[14].mxu0 }
 0x6fe   :  { %vm1880_vm15 = vcmp.ge.f32.partialorder %v1874_v11, 0.0  ;;  %v1882_v3 = vmul.f32 0.2, %v1874_v11  ;;  %v1878_v15 = vpop.f32.mrb[15].mxu0 }
 0x6ff   :  { %vm1881_vm0 = vcmp.ge.f32.partialorder %v1876_v13, 0.0  ;;  %v1883_v16 = vmul.f32 0.2, %v1876_v13 }
 0x700   :  { %v1884_v17 = vsel %vm1880_vm15, %v1874_v11, %v1882_v3 }
 0x701   :  { %v1885_v18 = vsel %vm1881_vm0, %v1876_v13, %v1883_v16  ;;  %v1886_v20 = vpack.c.bf16 %v1884_v17, %v1884_v17 }
 0x702   :  { %v1887_v19 = vpack.c.bf16 %v1885_v18, %v1885_v18 }
 0x704   :  { %2126 = vmatprep.mubr.bf16.mxu1 %v1887_v19 }
 0x705   :  { %2127 = vmatmul.mubr.bf16.vlgmr.msra.gmra.mrb[12].mxu1 %v1886_v20 }
 0x7d8   :  { %v2128_v24 = vpop.f32.mrb[12].mxu1 }
 0x7d9   :  { %v2129_v25 = vadd.f32 %v2128_v24, %v1927_v22  ;;  %v2130_v26 = vpop.f32.mrb[13].mxu1 }
 0x7da   :  { %v2131_v27 = vadd.f32 %v2130_v26, %v1931_v23  ;;  %v2132_v28 = vpop.f32.mrb[14].mxu1 }
 0x7db   :  { %vm2135_vm1 = vcmp.ge.f32.partialorder %v2129_v25, 0.0  ;;  %v2137_v29 = vmul.f32 0.2, %v2129_v25  ;;  %v2133_v30 = vpop.f32.mrb[15].mxu1 }
 0x7dc   :  { %vm2136_vm2 = vcmp.ge.f32.partialorder %v2131_v27, 0.0  ;;  %v2138_v31 = vmul.f32 0.2, %v2131_v27 }
 0x7dd   :  { %v2139_v32 = vsel %vm2135_vm1, %v2129_v25, %v2137_v29 }
 0x7de   :  { %v2140_v33 = vsel %vm2136_vm2, %v2131_v27, %v2138_v31 }
 0x7df   :  { %v2143_v34 = vcombine.low %v2139_v32, %v2140_v33 }
 0x7e1   :  { %2425 = vst.sshfl [vmem:[#allocation8] sm:$0x33 pattern:$0x76325410] %v2143_v34 }
 0x7e2   :  { %2901 = shalt.err (!%p2898_p0)
}
 0x7e3   :  { %s2902_s27 = scalar_lea.hbm %s3034_s3, 64 }
 0x7e4   :  { %p2903_p1 = scmp.ne.s32.totalorder %s3034_s3, %s2902_s27  ;;  %p2906_p2 = scmp.lt.u32.totalorder %s2902_s27, %s3034_s3 }
 0x7e6   :  { %p2908_p3 = pnand %p2906_p2, %p2903_p1 }
 0x7e8   :  { %2911 = shalt.err (!%p2908_p3)
}
 0x7e9   :  { %2162 = dma.vmem_to_hbm [thread:$0]  %s2160_s23, 64, %s3034_s3, [#allocation4]  }
 0x7ea   :  { %2916 = dma.done.wait [#allocation4], 64  }
 0x7eb   :  { %2917 = vsyncadd [#allocation4], 4294967232 }
 0x7ec   :  { %2166 = vsyncpa [#allocation3], 1 }
 0x7ed   :  { %2167 = vsyncpa [#allocation6], 1 }
 0x7ee   :  { %2168 = vsyncpa [#allocation4], 1 }

</bundles_post_ra>
